<compile_context>
chip_gen: v7x
topology: tpu7x:2x2x1
jax: 0.10.0
libtpu: 0.0.40
codegen_flags: <defaults>
</compile_context>

<pallas_src>
import functools
import math

import jax
import jax.numpy as jnp
from jax import lax
from jax.experimental import pallas as pl
from jax.experimental.pallas import tpu as pltpu


def _round_up(x, m):
    return ((x + m - 1) // m) * m


def _sigmoid(x):
    # Logistic via a single tanh -> 1 EUP push per element (vs exp + reciprocal).
    return 0.5 * (jnp.tanh(0.5 * x) + 1.0)


def _tpu_generation():
    """Best-effort (per-core VMEM bytes, #TensorCores usable via parallel dims)."""
    vmem = None
    try:
        info = pltpu.get_tpu_info()
        v = getattr(info, "vmem_capacity_bytes", None)
        if v:
            vmem = int(v)
    except Exception:
        vmem = None
    kind = ""
    try:
        kind = jax.devices()[0].device_kind.lower()
    except Exception:
        kind = ""
    n_tc = 2 if "v7" in kind else 1          # v5e/v6e: single TensorCore
    if vmem is None:
        vmem = 64 << 20                      # conservative: smallest per-core VMEM
    if "v7" in kind:
        vmem = min(vmem, 64 << 20)           # guard against per-chip reporting
    return vmem, n_tc


def _lstm_seq_kernel(x_ref, wx_hbm, wh_hbm, b_hbm,
                     y_ref, c_out_ref,
                     wx_sc, wh_sc, b_sc, zx_sc, h_sc, c_sc, dma_sem, *,
                     ts, bc, hp, seq_len, mm_dtype, unroll):
    """One (batch-shard, time-chunk) grid step of the LSTM recurrence.

    x_ref    : (1, ts*bc, I)  mm_dtype  raw input rows (row = t_in_chunk*bc + b)
    wx_hbm   : (I, 4*Hp)      mm_dtype  input-projection weight (HBM, ANY)
    wh_hbm   : (Hp, 4*Hp)     mm_dtype  recurrent weight (HBM, ANY)
    b_hbm    : (1, 4*Hp)      f32       fused gate bias (HBM, ANY)
    y_ref    : (ts, bc, Hp)   f32       per-step hidden outputs for this chunk
    c_out_ref: (bc, Hp)       f32       running cell state (resident output block)
    *_sc     : VMEM scratch (single-buffered weights, chunk x-projection, carries)
    """
    chunk = pl.program_id(1)                 # time-chunk axis ("arbitrary")

    @pl.when(chunk == 0)
    def _():
        # Weight-stationary parameter load: one DMA per shard into single-buffered
        # VMEM scratch (avoids the pipeline double-buffering a constant block).
        cp_wx = pltpu.make_async_copy(wx_hbm, wx_sc, dma_sem.at[0])
        cp_wh = pltpu.make_async_copy(wh_hbm, wh_sc, dma_sem.at[1])
        cp_b = pltpu.make_async_copy(b_hbm, b_sc, dma_sem.at[2])
        cp_wx.start()
        cp_wh.start()
        cp_b.start()
        cp_wx.wait()
        cp_wh.wait()
        cp_b.wait()
        h_sc[...] = jnp.zeros_like(h_sc)
        c_sc[...] = jnp.zeros_like(c_sc)

    # Hoisted per-chunk input projection: one (ts*bc, I) @ (I, 4*Hp) MXU matmul
    # (off the serial h-dependency chain); bias folded in here.
    zx_sc[...] = jnp.dot(x_ref[0], wx_sc[...],
                         preferred_element_type=jnp.float32) + b_sc[...]

    needs_mask = (seq_len % ts) != 0          # static: only compiled when needed

    def step(s, carry):
        h, c = carry
        off = pl.multiple_of(s * bc, bc)      # sublane-aligned (bc % 8 == 0)
        z = zx_sc[pl.ds(off, bc), :] + jnp.dot(
            h.astype(mm_dtype), wh_sc[...],
            preferred_element_type=jnp.float32)
        f = _sigmoid(z[:, 0 * hp:1 * hp])     # forget gate
        u = _sigmoid(z[:, 1 * hp:2 * hp])     # update gate
        g = jnp.tanh(z[:, 2 * hp:3 * hp])     # update candidates
        o = _sigmoid(z[:, 3 * hp:4 * hp])     # output gate
        c_new = f * c + u * g
        h_new = o * jnp.tanh(c_new)
        if needs_mask:
            valid = (chunk * ts + s) < seq_len
            h_new = jnp.where(valid, h_new, h)
            c_new = jnp.where(valid, c_new, c)
        y_ref[s] = h_new.astype(y_ref.dtype)
        return h_new, c_new

    h, c = lax.fori_loop(0, ts, step, (h_sc[...], c_sc[...]), unroll=unroll)
    h_sc[...] = h
    c_sc[...] = c
    # Unconditional resident-VMEM store; value after the last chunk == final cell.
    c_out_ref[...] = c.astype(c_out_ref.dtype)


def unrolled_lstm_forward(x, w_cat, b_cat, hidden_size, *,
                          timestep_chunk=None, mm_dtype=jnp.bfloat16,
                          batch_shards=None):
    """x: (B, T, I) batch_first.

    Returns (outputs (T, 1, B, H), (hidden (1, B, H), cell (1, B, H))),
    matching UnrolledLSTM.forward with state=None in eval mode.
    """
    B, T, I = x.shape
    H = hidden_size
    Hp = _round_up(H, 128)            # lane-aligned hidden: full-vreg gate slices
    Gp = 4 * Hp

    vmem_cap, n_tc = _tpu_generation()

    if batch_shards is None:
        # Batch sharding only pays off on multi-TensorCore chips (v7x) and only
        # when each shard still keeps the recurrent matmul's M >= 128 rows.
        batch_shards = 2 if (n_tc >= 2 and B >= 256) else 1

    Bp = _round_up(B, 16 * batch_shards)   # sublane-aligned rows per shard
    bc = Bp // batch_shards

    mm_bytes = jnp.dtype(mm_dtype).itemsize
    out_bytes = 4                          # f32 outputs (matches PyTorch f32 math)

    # --- derive the time-chunk size from the per-generation VMEM budget -------
    budget = (100 << 20) if vmem_cap >= (96 << 20) else (52 << 20)
    budget = min(budget, max(vmem_cap - (8 << 20), 16 << 20))
    fixed = ((I + Hp) * Gp * mm_bytes      # resident W_x + W_h (single copy)
             + Gp * 4                      # resident bias
             + 2 * bc * Hp * 4             # h / c carries
             + 2 * bc * Hp * out_bytes)    # cell-state output block (2 bufs)
    per_ts = (bc * Gp * 4                  # per-chunk x-projection scratch
              + 2 * bc * I * mm_bytes      # streamed x chunk (2 bufs)
              + 2 * bc * Hp * out_bytes)   # hidden-output chunk (2 bufs)
    ts = int(max(1, min(T, (budget - fixed) // per_ts, 256)))
    if timestep_chunk is not None:
        ts = int(max(1, min(ts, timestep_chunk)))
    n_chunks = -(-T // ts)
    t_pad = n_chunks * ts
    vmem_limit = int(min(max(fixed + ts * per_ts + (4 << 20), 32 << 20), budget))

    # --- parameters: per-gate padded to Hp, fused, MXU operands in mm_dtype ---
    w_x = w_cat[:I, :].reshape(I, 4, H)
    w_h = w_cat[I:, :].reshape(H, 4, H)
    w_x_p = jnp.pad(w_x, ((0, 0), (0, 0), (0, Hp - H))).reshape(I, Gp).astype(mm_dtype)
    w_h_p = jnp.pad(w_h, ((0, Hp - H), (0, 0), (0, Hp - H))).reshape(Hp, Gp).astype(mm_dtype)
    b_p = jnp.pad(b_cat.reshape(4, H), ((0, 0), (0, Hp - H))).reshape(1, Gp).astype(jnp.float32)

    # --- input: pad batch/time, time-major rows (row = t*bc + b), stream bf16 --
    x_p = jnp.pad(x, ((0, Bp - B), (0, t_pad - T), (0, 0)))
    x_flat = (x_p.reshape(batch_shards, bc, t_pad, I)
                  .transpose(0, 2, 1, 3)
                  .reshape(batch_shards, t_pad * bc, I)
                  .astype(mm_dtype))

    grid_spec = pltpu.PrefetchScalarGridSpec(
        num_scalar_prefetch=0,
        grid=(batch_shards, n_chunks),
        in_specs=[
            pl.BlockSpec((1, ts * bc, I), lambda b, c: (b, c, 0)),  # x chunk
            pl.BlockSpec(memory_space=pl.ANY),                       # W_x (HBM)
            pl.BlockSpec(memory_space=pl.ANY),                       # W_h (HBM)
            pl.BlockSpec(memory_space=pl.ANY),                       # bias (HBM)
        ],
        out_specs=[
            pl.BlockSpec((ts, bc, Hp), lambda b, c: (c, b, 0)),      # hidden chunk
            pl.BlockSpec((bc, Hp), lambda b, c: (b, 0)),             # running cell
        ],
        scratch_shapes=[
            pltpu.VMEM((I, Gp), mm_dtype),               # W_x (single-buffered)
            pltpu.VMEM((Hp, Gp), mm_dtype),              # W_h (single-buffered)
            pltpu.VMEM((1, Gp), jnp.float32),            # bias
            pltpu.VMEM((ts * bc, Gp), jnp.float32),      # per-chunk x-projection
            pltpu.VMEM((bc, Hp), jnp.float32),           # h carry
            pltpu.VMEM((bc, Hp), jnp.float32),           # c carry
            pltpu.SemaphoreType.DMA((3,)),               # weight-load semaphores
        ],
    )

    kernel = functools.partial(
        _lstm_seq_kernel, ts=ts, bc=bc, hp=Hp, seq_len=T,
        mm_dtype=mm_dtype, unroll=min(8, ts))

    y, c_fin = pl.pallas_call(
        kernel,
        out_shape=(
            jax.ShapeDtypeStruct((t_pad, Bp, Hp), jnp.float32),
            jax.ShapeDtypeStruct((Bp, Hp), jnp.float32),
        ),
        grid_spec=grid_spec,
        compiler_params=pltpu.CompilerParams(
            dimension_semantics=("parallel", "arbitrary"),  # shards || time serial
            vmem_limit_bytes=vmem_limit,
        ),
    )(x_flat, w_x_p, w_h_p, b_p)

    y = y[:T, :B, :H]                          # drop batch / time / lane padding
    outputs = y.reshape(T, 1, B, H)            # torch.stack of (1,B,H) along dim 0
    hidden = y[T - 1][None]                    # inter-step dropout is identity (eval)
    cell = c_fin[:B, :H][None]
    return outputs, (hidden, cell)


def init_params(key, input_size, hidden_size):
    """Deterministic init matching nn.init.uniform_(-sqrt_k, sqrt_k), sqrt_k = 1/sqrt(H)."""
    sqrt_k = math.sqrt(1.0 / hidden_size)
    IH = input_size + hidden_size
    keys = jax.random.split(key, 8)
    # Per-gate Linear weights are (H, I+H) in torch; transpose and fuse to (I+H, 4H).
    # Gate order: [forget, update, candidates, output].
    ws, bs = [], []
    for i in range(4):
        w = jax.random.uniform(keys[2 * i], (hidden_size, IH),
                               minval=-sqrt_k, maxval=sqrt_k, dtype=jnp.float32)
        b = jax.random.uniform(keys[2 * i + 1], (hidden_size,),
                               minval=-sqrt_k, maxval=sqrt_k, dtype=jnp.float32)
        ws.append(w.T)
        bs.append(b)
    w_cat = jnp.concatenate(ws, axis=1)        # (I+H, 4H)
    b_cat = jnp.concatenate(bs, axis=0)        # (4H,)
    return w_cat, b_cat


def reference_forward_f32(x, w_cat, b_cat, hidden_size):
    """Pure-JAX f32 reference mirroring the PyTorch loop exactly."""
    B, T, I = x.shape
    H = hidden_size
    h = jnp.zeros((B, H), jnp.float32)
    c = jnp.zeros((B, H), jnp.float32)
    outs = []
    for t in range(T):
        xh = jnp.concatenate([x[:, t, :], h], axis=-1)
        z = jnp.dot(xh, w_cat, precision=jax.lax.Precision.HIGHEST) + b_cat
        f = jax.nn.sigmoid(z[:, 0 * H:1 * H])
        u = jax.nn.sigmoid(z[:, 1 * H:2 * H])
        g = jnp.tanh(z[:, 2 * H:3 * H])
        o = jax.nn.sigmoid(z[:, 3 * H:4 * H])
        c = f * c + u * g
        h = o * jnp.tanh(c)
        outs.append(h[None])
    return jnp.stack(outs, axis=0), (h[None], c[None])


def reference_forward_matched(x, w_cat, b_cat, hidden_size, mm_dtype=jnp.bfloat16):
    """Pure-JAX reference doing the same math as the kernel
    (bf16 x / W_x / W_h MXU operands, f32 accumulation, tanh-form sigmoid)."""
    B, T, I = x.shape
    H = hidden_size
    w_x = w_cat[:I, :].astype(mm_dtype)
    w_h = w_cat[I:, :].astype(mm_dtype)
    xb = x.astype(mm_dtype)
    h = jnp.zeros((B, H), jnp.float32)
    c = jnp.zeros((B, H), jnp.float32)
    outs = []
    for t in range(T):
        z = (jnp.dot(xb[:, t, :], w_x, preferred_element_type=jnp.float32)
             + b_cat
             + jnp.dot(h.astype(mm_dtype), w_h, preferred_element_type=jnp.float32))
        f = _sigmoid(z[:, 0 * H:1 * H])
        u = _sigmoid(z[:, 1 * H:2 * H])
        g = jnp.tanh(z[:, 2 * H:3 * H])
        o = _sigmoid(z[:, 3 * H:4 * H])
        c = f * c + u * g
        h = o * jnp.tanh(c)
        outs.append(h[None])
    return jnp.stack(outs, axis=0), (h[None], c[None])


def _run_case(batch, seq, input_size, hidden_size, seed, timestep_chunk=None):
    key = jax.random.PRNGKey(seed)
    kx, kp = jax.random.split(key)
    x = jax.random.normal(kx, (batch, seq, input_size), dtype=jnp.float32)
    w_cat, b_cat = init_params(kp, input_size, hidden_size)

    outputs, (hidden, cell) = unrolled_lstm_forward(
        x, w_cat, b_cat, hidden_size, timestep_chunk=timestep_chunk)
    jax.block_until_ready(outputs)
    jax.block_until_ready(hidden)
    jax.block_until_ready(cell)

    assert outputs.shape == (seq, 1, batch, hidden_size)
    assert hidden.shape == (1, batch, hidden_size)
    assert cell.shape == (1, batch, hidden_size)

    # Strict check vs a reference computing the same math (bf16 MXU operands).
    m_out, (m_h, m_c) = reference_forward_matched(x, w_cat, b_cat, hidden_size)
    assert jnp.allclose(outputs, m_out, atol=5e-3, rtol=5e-3)
    assert jnp.allclose(hidden, m_h, atol=5e-3, rtol=5e-3)
    assert jnp.allclose(cell, m_c, atol=5e-3, rtol=5e-3)

    # Looser check vs the full-f32 PyTorch-mirroring reference.
    r_out, (r_h, r_c) = reference_forward_f32(x, w_cat, b_cat, hidden_size)
    assert jnp.allclose(outputs, r_out, atol=5e-2, rtol=5e-2)
    assert jnp.allclose(hidden, r_h, atol=5e-2, rtol=5e-2)
    assert jnp.allclose(cell, r_c, atol=5e-2, rtol=5e-2)


if __name__ == "__main__":
    # Small shapes consistent with the module.
    _run_case(batch=2, seq=8, input_size=4, hidden_size=32, seed=0)
    # Multi-chunk path: exercises the cross-chunk h/c carries, the ragged tail
    # (T % ts != 0) masking, and an already lane-aligned hidden size.
    _run_case(batch=3, seq=5, input_size=6, hidden_size=128, seed=1,
              timestep_chunk=2)
    print("KERNEL_OK")
</pallas_src>

<mosaic_0001>
module attributes {stable_mosaic.version = 11 : i64} {
  func.func @_lstm_seq_kernel(%arg0: i32, %arg1: i32, %arg2: memref<1x128x4xbf16, #tpu.memory_space<vmem>>, %arg3: memref<4x512xbf16, #tpu.memory_space<any>>, %arg4: memref<128x512xbf16, #tpu.memory_space<any>>, %arg5: memref<1x512xf32, #tpu.memory_space<any>>, %arg6: memref<8x16x128xf32, #tpu.memory_space<vmem>>, %arg7: memref<16x128xf32, #tpu.memory_space<vmem>>, %arg8: memref<4x512xbf16, #tpu.memory_space<vmem>>, %arg9: memref<128x512xbf16, #tpu.memory_space<vmem>>, %arg10: memref<1x512xf32, #tpu.memory_space<vmem>>, %arg11: memref<128x512xf32, #tpu.memory_space<vmem>>, %arg12: memref<16x128xf32, #tpu.memory_space<vmem>>, %arg13: memref<16x128xf32, #tpu.memory_space<vmem>>, %arg14: memref<3x!tpu.dma_semaphore, #tpu.memory_space<semaphore_mem>>) attributes {dimension_semantics = [#tpu.dimension_semantics<parallel>, #tpu.dimension_semantics<arbitrary>], iteration_bounds = array<i64: 1, 1>, scalar_prefetch = 0 : i64, scratch_operands = 7 : i64, tpu.core_type = #tpu.core_type<tc>, window_params = [{transform_indices = @transform_0, window_bounds = array<i64: 1, 128, 4>}, {}, {}, {}, {transform_indices = @transform_4, window_bounds = array<i64: 8, 16, 128>}, {transform_indices = @transform_5, window_bounds = array<i64: 16, 128>}]} {
    %c0_i32 = arith.constant 0 : i32
    %0 = arith.cmpi eq, %arg1, %c0_i32 : i32
    %1 = arith.extui %0 : i1 to i32
    %c0_i32_0 = arith.constant 0 : i32
    %2 = arith.cmpi ne, %1, %c0_i32_0 : i32
    scf.if %2 {
      %c0_i32_147 = arith.constant 0 : i32
      %360 = tpu.memref_slice %arg14[%c0_i32_147] : memref<3x!tpu.dma_semaphore, #tpu.memory_space<semaphore_mem>> -> memref<1x!tpu.dma_semaphore, #tpu.memory_space<semaphore_mem>>
      %361 = tpu.memref_squeeze %360 : memref<1x!tpu.dma_semaphore, #tpu.memory_space<semaphore_mem>> -> memref<!tpu.dma_semaphore, #tpu.memory_space<semaphore_mem>>
      tpu.enqueue_dma source(%arg3 : memref<4x512xbf16, #tpu.memory_space<any>>) target(%arg8 : memref<4x512xbf16, #tpu.memory_space<vmem>>) target_semaphore(%361 : memref<!tpu.dma_semaphore, #tpu.memory_space<semaphore_mem>>)
      %c1_i32_148 = arith.constant 1 : i32
      %362 = tpu.memref_slice %arg14[%c1_i32_148] : memref<3x!tpu.dma_semaphore, #tpu.memory_space<semaphore_mem>> -> memref<1x!tpu.dma_semaphore, #tpu.memory_space<semaphore_mem>>
      %363 = tpu.memref_squeeze %362 : memref<1x!tpu.dma_semaphore, #tpu.memory_space<semaphore_mem>> -> memref<!tpu.dma_semaphore, #tpu.memory_space<semaphore_mem>>
      tpu.enqueue_dma source(%arg4 : memref<128x512xbf16, #tpu.memory_space<any>>) target(%arg9 : memref<128x512xbf16, #tpu.memory_space<vmem>>) target_semaphore(%363 : memref<!tpu.dma_semaphore, #tpu.memory_space<semaphore_mem>>)
      %c2_i32_149 = arith.constant 2 : i32
      %364 = tpu.memref_slice %arg14[%c2_i32_149] : memref<3x!tpu.dma_semaphore, #tpu.memory_space<semaphore_mem>> -> memref<1x!tpu.dma_semaphore, #tpu.memory_space<semaphore_mem>>
      %365 = tpu.memref_squeeze %364 : memref<1x!tpu.dma_semaphore, #tpu.memory_space<semaphore_mem>> -> memref<!tpu.dma_semaphore, #tpu.memory_space<semaphore_mem>>
      tpu.enqueue_dma source(%arg5 : memref<1x512xf32, #tpu.memory_space<any>>) target(%arg10 : memref<1x512xf32, #tpu.memory_space<vmem>>) target_semaphore(%365 : memref<!tpu.dma_semaphore, #tpu.memory_space<semaphore_mem>>)
      %c0_i32_150 = arith.constant 0 : i32
      %366 = tpu.memref_slice %arg14[%c0_i32_150] : memref<3x!tpu.dma_semaphore, #tpu.memory_space<semaphore_mem>> -> memref<1x!tpu.dma_semaphore, #tpu.memory_space<semaphore_mem>>
      %367 = tpu.memref_squeeze %366 : memref<1x!tpu.dma_semaphore, #tpu.memory_space<semaphore_mem>> -> memref<!tpu.dma_semaphore, #tpu.memory_space<semaphore_mem>>
      tpu.wait_dma2 semaphore(%367 : memref<!tpu.dma_semaphore, #tpu.memory_space<semaphore_mem>>) src(%arg3 : memref<4x512xbf16, #tpu.memory_space<any>>) dst(%arg8 : memref<4x512xbf16, #tpu.memory_space<vmem>>)
      %c1_i32_151 = arith.constant 1 : i32
      %368 = tpu.memref_slice %arg14[%c1_i32_151] : memref<3x!tpu.dma_semaphore, #tpu.memory_space<semaphore_mem>> -> memref<1x!tpu.dma_semaphore, #tpu.memory_space<semaphore_mem>>
      %369 = tpu.memref_squeeze %368 : memref<1x!tpu.dma_semaphore, #tpu.memory_space<semaphore_mem>> -> memref<!tpu.dma_semaphore, #tpu.memory_space<semaphore_mem>>
      tpu.wait_dma2 semaphore(%369 : memref<!tpu.dma_semaphore, #tpu.memory_space<semaphore_mem>>) src(%arg4 : memref<128x512xbf16, #tpu.memory_space<any>>) dst(%arg9 : memref<128x512xbf16, #tpu.memory_space<vmem>>)
      %c2_i32_152 = arith.constant 2 : i32
      %370 = tpu.memref_slice %arg14[%c2_i32_152] : memref<3x!tpu.dma_semaphore, #tpu.memory_space<semaphore_mem>> -> memref<1x!tpu.dma_semaphore, #tpu.memory_space<semaphore_mem>>
      %371 = tpu.memref_squeeze %370 : memref<1x!tpu.dma_semaphore, #tpu.memory_space<semaphore_mem>> -> memref<!tpu.dma_semaphore, #tpu.memory_space<semaphore_mem>>
      tpu.wait_dma2 semaphore(%371 : memref<!tpu.dma_semaphore, #tpu.memory_space<semaphore_mem>>) src(%arg5 : memref<1x512xf32, #tpu.memory_space<any>>) dst(%arg10 : memref<1x512xf32, #tpu.memory_space<vmem>>)
      %cst_153 = arith.constant 0.000000e+00 : f32
      %372 = vector.broadcast %cst_153 : f32 to vector<16x128xf32>
      %c0_154 = arith.constant 0 : index
      %c0_155 = arith.constant 0 : index
      %373 = vector.load %arg12[%c0_154, %c0_155] : memref<16x128xf32, #tpu.memory_space<vmem>>, vector<16x128xf32>
      tpu.vector_store %arg12[%c0_154, %c0_155], %372 {strides = array<i32>} : memref<16x128xf32, #tpu.memory_space<vmem>>, vector<16x128xf32>,
      %cst_156 = arith.constant 0.000000e+00 : f32
      %374 = vector.broadcast %cst_156 : f32 to vector<16x128xf32>
      %c0_157 = arith.constant 0 : index
      %c0_158 = arith.constant 0 : index
      %375 = vector.load %arg13[%c0_157, %c0_158] : memref<16x128xf32, #tpu.memory_space<vmem>>, vector<16x128xf32>
      tpu.vector_store %arg13[%c0_157, %c0_158], %374 {strides = array<i32>} : memref<16x128xf32, #tpu.memory_space<vmem>>, vector<16x128xf32>,
    } else {
    }
    %c0 = arith.constant 0 : index
    %c0_1 = arith.constant 0 : index
    %c0_2 = arith.constant 0 : index
    %3 = vector.load %arg2[%c0, %c0_1, %c0_2] : memref<1x128x4xbf16, #tpu.memory_space<vmem>>, vector<1x128x4xbf16>
    %4 = vector.shape_cast %3 : vector<1x128x4xbf16> to vector<128x4xbf16>
    %c0_3 = arith.constant 0 : index
    %c0_4 = arith.constant 0 : index
    %5 = vector.load %arg8[%c0_3, %c0_4] : memref<4x512xbf16, #tpu.memory_space<vmem>>, vector<4x512xbf16>
    %cst = arith.constant dense<0.000000e+00> : vector<128x512xf32>
    %6 = tpu.matmul %4, %5, %cst {dimension_numbers = #tpu.dot_dimension_numbers<[1], [0], [0], [1], [0, 0, 1, 1], [], []>} : vector<128x4xbf16>, vector<4x512xbf16>, vector<128x512xf32> -> vector<128x512xf32>
    %c0_5 = arith.constant 0 : index
    %c0_6 = arith.constant 0 : index
    %7 = vector.load %arg10[%c0_5, %c0_6] : memref<1x512xf32, #tpu.memory_space<vmem>>, vector<1x512xf32>
    %8 = vector.broadcast %7 : vector<1x512xf32> to vector<128x512xf32>
    %9 = arith.addf %6, %8 : vector<128x512xf32>
    %c0_7 = arith.constant 0 : index
    %c0_8 = arith.constant 0 : index
    %10 = vector.load %arg11[%c0_7, %c0_8] : memref<128x512xf32, #tpu.memory_space<vmem>>, vector<128x512xf32>
    tpu.vector_store %arg11[%c0_7, %c0_8], %9 {strides = array<i32>} : memref<128x512xf32, #tpu.memory_space<vmem>>, vector<128x512xf32>,
    %c0_9 = arith.constant 0 : index
    %c0_10 = arith.constant 0 : index
    %11 = vector.load %arg12[%c0_9, %c0_10] : memref<16x128xf32, #tpu.memory_space<vmem>>, vector<16x128xf32>
    %c0_11 = arith.constant 0 : index
    %c0_12 = arith.constant 0 : index
    %12 = vector.load %arg13[%c0_11, %c0_12] : memref<16x128xf32, #tpu.memory_space<vmem>>, vector<16x128xf32>
    %c0_i32_13 = arith.constant 0 : i32
    %c16_i32 = arith.constant 16 : i32
    %13 = arith.muli %c0_i32_13, %c16_i32 : i32
    %14 = tpu.assume_multiple %13, 16 : i32
    %15 = arith.index_cast %14 : i32 to index
    %c0_14 = arith.constant 0 : index
    %16 = vector.load %arg11[%15, %c0_14] : memref<128x512xf32, #tpu.memory_space<vmem>>, vector<16x512xf32>
    %17 = arith.truncf %11 : vector<16x128xf32> to vector<16x128xbf16>
    %c0_15 = arith.constant 0 : index
    %c0_16 = arith.constant 0 : index
    %18 = vector.load %arg9[%c0_15, %c0_16] : memref<128x512xbf16, #tpu.memory_space<vmem>>, vector<128x512xbf16>
    %cst_17 = arith.constant dense<0.000000e+00> : vector<16x512xf32>
    %19 = tpu.matmul %17, %18, %cst_17 {dimension_numbers = #tpu.dot_dimension_numbers<[1], [0], [0], [1], [0, 0, 1, 1], [], []>} : vector<16x128xbf16>, vector<128x512xbf16>, vector<16x512xf32> -> vector<16x512xf32>
    %20 = arith.addf %16, %19 : vector<16x512xf32>
    %21 = vector.extract_strided_slice %20 {offsets = [0, 0], sizes = [16, 128], strides = [1, 1]} : vector<16x512xf32> to vector<16x128xf32>
    %cst_18 = arith.constant 5.000000e-01 : f32
    %22 = vector.broadcast %cst_18 : f32 to vector<16x128xf32>
    %23 = arith.mulf %22, %21 : vector<16x128xf32>
    %24 = math.tanh %23 : vector<16x128xf32>
    %cst_19 = arith.constant 1.000000e+00 : f32
    %25 = vector.broadcast %cst_19 : f32 to vector<16x128xf32>
    %26 = arith.addf %24, %25 : vector<16x128xf32>
    %cst_20 = arith.constant 5.000000e-01 : f32
    %27 = vector.broadcast %cst_20 : f32 to vector<16x128xf32>
    %28 = arith.mulf %27, %26 : vector<16x128xf32>
    %29 = vector.extract_strided_slice %20 {offsets = [0, 128], sizes = [16, 128], strides = [1, 1]} : vector<16x512xf32> to vector<16x128xf32>
    %cst_21 = arith.constant 5.000000e-01 : f32
    %30 = vector.broadcast %cst_21 : f32 to vector<16x128xf32>
    %31 = arith.mulf %30, %29 : vector<16x128xf32>
    %32 = math.tanh %31 : vector<16x128xf32>
    %cst_22 = arith.constant 1.000000e+00 : f32
    %33 = vector.broadcast %cst_22 : f32 to vector<16x128xf32>
    %34 = arith.addf %32, %33 : vector<16x128xf32>
    %cst_23 = arith.constant 5.000000e-01 : f32
    %35 = vector.broadcast %cst_23 : f32 to vector<16x128xf32>
    %36 = arith.mulf %35, %34 : vector<16x128xf32>
    %37 = vector.extract_strided_slice %20 {offsets = [0, 256], sizes = [16, 128], strides = [1, 1]} : vector<16x512xf32> to vector<16x128xf32>
    %38 = math.tanh %37 : vector<16x128xf32>
    %39 = vector.extract_strided_slice %20 {offsets = [0, 384], sizes = [16, 128], strides = [1, 1]} : vector<16x512xf32> to vector<16x128xf32>
    %cst_24 = arith.constant 5.000000e-01 : f32
    %40 = vector.broadcast %cst_24 : f32 to vector<16x128xf32>
    %41 = arith.mulf %40, %39 : vector<16x128xf32>
    %42 = math.tanh %41 : vector<16x128xf32>
    %cst_25 = arith.constant 1.000000e+00 : f32
    %43 = vector.broadcast %cst_25 : f32 to vector<16x128xf32>
    %44 = arith.addf %42, %43 : vector<16x128xf32>
    %cst_26 = arith.constant 5.000000e-01 : f32
    %45 = vector.broadcast %cst_26 : f32 to vector<16x128xf32>
    %46 = arith.mulf %45, %44 : vector<16x128xf32>
    %47 = arith.mulf %28, %12 : vector<16x128xf32>
    %48 = arith.mulf %36, %38 : vector<16x128xf32>
    %49 = arith.addf %47, %48 : vector<16x128xf32>
    %50 = math.tanh %49 : vector<16x128xf32>
    %51 = arith.mulf %46, %50 : vector<16x128xf32>
    %52 = arith.index_cast %c0_i32_13 : i32 to index
    %c0_27 = arith.constant 0 : index
    %c0_28 = arith.constant 0 : index
    %53 = vector.load %arg6[%52, %c0_27, %c0_28] : memref<8x16x128xf32, #tpu.memory_space<vmem>>, vector<1x16x128xf32>
    %54 = vector.shape_cast %53 : vector<1x16x128xf32> to vector<16x128xf32>
    %55 = vector.shape_cast %51 : vector<16x128xf32> to vector<1x16x128xf32>
    tpu.vector_store %arg6[%52, %c0_27, %c0_28], %55 {strides = array<i32>} : memref<8x16x128xf32, #tpu.memory_space<vmem>>, vector<1x16x128xf32>,
    %c1_i32 = arith.constant 1 : i32
    %c16_i32_29 = arith.constant 16 : i32
    %56 = arith.muli %c1_i32, %c16_i32_29 : i32
    %57 = tpu.assume_multiple %56, 16 : i32
    %58 = arith.index_cast %57 : i32 to index
    %c0_30 = arith.constant 0 : index
    %59 = vector.load %arg11[%58, %c0_30] : memref<128x512xf32, #tpu.memory_space<vmem>>, vector<16x512xf32>
    %60 = arith.truncf %51 : vector<16x128xf32> to vector<16x128xbf16>
    %c0_31 = arith.constant 0 : index
    %c0_32 = arith.constant 0 : index
    %61 = vector.load %arg9[%c0_31, %c0_32] : memref<128x512xbf16, #tpu.memory_space<vmem>>, vector<128x512xbf16>
    %cst_33 = arith.constant dense<0.000000e+00> : vector<16x512xf32>
    %62 = tpu.matmul %60, %61, %cst_33 {dimension_numbers = #tpu.dot_dimension_numbers<[1], [0], [0], [1], [0, 0, 1, 1], [], []>} : vector<16x128xbf16>, vector<128x512xbf16>, vector<16x512xf32> -> vector<16x512xf32>
    %63 = arith.addf %59, %62 : vector<16x512xf32>
    %64 = vector.extract_strided_slice %63 {offsets = [0, 0], sizes = [16, 128], strides = [1, 1]} : vector<16x512xf32> to vector<16x128xf32>
    %cst_34 = arith.constant 5.000000e-01 : f32
    %65 = vector.broadcast %cst_34 : f32 to vector<16x128xf32>
    %66 = arith.mulf %65, %64 : vector<16x128xf32>
    %67 = math.tanh %66 : vector<16x128xf32>
    %cst_35 = arith.constant 1.000000e+00 : f32
    %68 = vector.broadcast %cst_35 : f32 to vector<16x128xf32>
    %69 = arith.addf %67, %68 : vector<16x128xf32>
    %cst_36 = arith.constant 5.000000e-01 : f32
    %70 = vector.broadcast %cst_36 : f32 to vector<16x128xf32>
    %71 = arith.mulf %70, %69 : vector<16x128xf32>
    %72 = vector.extract_strided_slice %63 {offsets = [0, 128], sizes = [16, 128], strides = [1, 1]} : vector<16x512xf32> to vector<16x128xf32>
    %cst_37 = arith.constant 5.000000e-01 : f32
    %73 = vector.broadcast %cst_37 : f32 to vector<16x128xf32>
    %74 = arith.mulf %73, %72 : vector<16x128xf32>
    %75 = math.tanh %74 : vector<16x128xf32>
    %cst_38 = arith.constant 1.000000e+00 : f32
    %76 = vector.broadcast %cst_38 : f32 to vector<16x128xf32>
    %77 = arith.addf %75, %76 : vector<16x128xf32>
    %cst_39 = arith.constant 5.000000e-01 : f32
    %78 = vector.broadcast %cst_39 : f32 to vector<16x128xf32>
    %79 = arith.mulf %78, %77 : vector<16x128xf32>
    %80 = vector.extract_strided_slice %63 {offsets = [0, 256], sizes = [16, 128], strides = [1, 1]} : vector<16x512xf32> to vector<16x128xf32>
    %81 = math.tanh %80 : vector<16x128xf32>
    %82 = vector.extract_strided_slice %63 {offsets = [0, 384], sizes = [16, 128], strides = [1, 1]} : vector<16x512xf32> to vector<16x128xf32>
    %cst_40 = arith.constant 5.000000e-01 : f32
    %83 = vector.broadcast %cst_40 : f32 to vector<16x128xf32>
    %84 = arith.mulf %83, %82 : vector<16x128xf32>
    %85 = math.tanh %84 : vector<16x128xf32>
    %cst_41 = arith.constant 1.000000e+00 : f32
    %86 = vector.broadcast %cst_41 : f32 to vector<16x128xf32>
    %87 = arith.addf %85, %86 : vector<16x128xf32>
    %cst_42 = arith.constant 5.000000e-01 : f32
    %88 = vector.broadcast %cst_42 : f32 to vector<16x128xf32>
    %89 = arith.mulf %88, %87 : vector<16x128xf32>
    %90 = arith.mulf %71, %49 : vector<16x128xf32>
    %91 = arith.mulf %79, %81 : vector<16x128xf32>
    %92 = arith.addf %90, %91 : vector<16x128xf32>
    %93 = math.tanh %92 : vector<16x128xf32>
    %94 = arith.mulf %89, %93 : vector<16x128xf32>
    %95 = arith.index_cast %c1_i32 : i32 to index
    %c0_43 = arith.constant 0 : index
    %c0_44 = arith.constant 0 : index
    %96 = vector.load %arg6[%95, %c0_43, %c0_44] : memref<8x16x128xf32, #tpu.memory_space<vmem>>, vector<1x16x128xf32>
    %97 = vector.shape_cast %96 : vector<1x16x128xf32> to vector<16x128xf32>
    %98 = vector.shape_cast %94 : vector<16x128xf32> to vector<1x16x128xf32>
    tpu.vector_store %arg6[%95, %c0_43, %c0_44], %98 {strides = array<i32>} : memref<8x16x128xf32, #tpu.memory_space<vmem>>, vector<1x16x128xf32>,
    %c2_i32 = arith.constant 2 : i32
    %c16_i32_45 = arith.constant 16 : i32
    %99 = arith.muli %c2_i32, %c16_i32_45 : i32
    %100 = tpu.assume_multiple %99, 16 : i32
    %101 = arith.index_cast %100 : i32 to index
    %c0_46 = arith.constant 0 : index
    %102 = vector.load %arg11[%101, %c0_46] : memref<128x512xf32, #tpu.memory_space<vmem>>, vector<16x512xf32>
    %103 = arith.truncf %94 : vector<16x128xf32> to vector<16x128xbf16>
    %c0_47 = arith.constant 0 : index
    %c0_48 = arith.constant 0 : index
    %104 = vector.load %arg9[%c0_47, %c0_48] : memref<128x512xbf16, #tpu.memory_space<vmem>>, vector<128x512xbf16>
    %cst_49 = arith.constant dense<0.000000e+00> : vector<16x512xf32>
    %105 = tpu.matmul %103, %104, %cst_49 {dimension_numbers = #tpu.dot_dimension_numbers<[1], [0], [0], [1], [0, 0, 1, 1], [], []>} : vector<16x128xbf16>, vector<128x512xbf16>, vector<16x512xf32> -> vector<16x512xf32>
    %106 = arith.addf %102, %105 : vector<16x512xf32>
    %107 = vector.extract_strided_slice %106 {offsets = [0, 0], sizes = [16, 128], strides = [1, 1]} : vector<16x512xf32> to vector<16x128xf32>
    %cst_50 = arith.constant 5.000000e-01 : f32
    %108 = vector.broadcast %cst_50 : f32 to vector<16x128xf32>
    %109 = arith.mulf %108, %107 : vector<16x128xf32>
    %110 = math.tanh %109 : vector<16x128xf32>
    %cst_51 = arith.constant 1.000000e+00 : f32
    %111 = vector.broadcast %cst_51 : f32 to vector<16x128xf32>
    %112 = arith.addf %110, %111 : vector<16x128xf32>
    %cst_52 = arith.constant 5.000000e-01 : f32
    %113 = vector.broadcast %cst_52 : f32 to vector<16x128xf32>
    %114 = arith.mulf %113, %112 : vector<16x128xf32>
    %115 = vector.extract_strided_slice %106 {offsets = [0, 128], sizes = [16, 128], strides = [1, 1]} : vector<16x512xf32> to vector<16x128xf32>
    %cst_53 = arith.constant 5.000000e-01 : f32
    %116 = vector.broadcast %cst_53 : f32 to vector<16x128xf32>
    %117 = arith.mulf %116, %115 : vector<16x128xf32>
    %118 = math.tanh %117 : vector<16x128xf32>
    %cst_54 = arith.constant 1.000000e+00 : f32
    %119 = vector.broadcast %cst_54 : f32 to vector<16x128xf32>
    %120 = arith.addf %118, %119 : vector<16x128xf32>
    %cst_55 = arith.constant 5.000000e-01 : f32
    %121 = vector.broadcast %cst_55 : f32 to vector<16x128xf32>
    %122 = arith.mulf %121, %120 : vector<16x128xf32>
    %123 = vector.extract_strided_slice %106 {offsets = [0, 256], sizes = [16, 128], strides = [1, 1]} : vector<16x512xf32> to vector<16x128xf32>
    %124 = math.tanh %123 : vector<16x128xf32>
    %125 = vector.extract_strided_slice %106 {offsets = [0, 384], sizes = [16, 128], strides = [1, 1]} : vector<16x512xf32> to vector<16x128xf32>
    %cst_56 = arith.constant 5.000000e-01 : f32
    %126 = vector.broadcast %cst_56 : f32 to vector<16x128xf32>
    %127 = arith.mulf %126, %125 : vector<16x128xf32>
    %128 = math.tanh %127 : vector<16x128xf32>
    %cst_57 = arith.constant 1.000000e+00 : f32
    %129 = vector.broadcast %cst_57 : f32 to vector<16x128xf32>
    %130 = arith.addf %128, %129 : vector<16x128xf32>
    %cst_58 = arith.constant 5.000000e-01 : f32
    %131 = vector.broadcast %cst_58 : f32 to vector<16x128xf32>
    %132 = arith.mulf %131, %130 : vector<16x128xf32>
    %133 = arith.mulf %114, %92 : vector<16x128xf32>
    %134 = arith.mulf %122, %124 : vector<16x128xf32>
    %135 = arith.addf %133, %134 : vector<16x128xf32>
    %136 = math.tanh %135 : vector<16x128xf32>
    %137 = arith.mulf %132, %136 : vector<16x128xf32>
    %138 = arith.index_cast %c2_i32 : i32 to index
    %c0_59 = arith.constant 0 : index
    %c0_60 = arith.constant 0 : index
    %139 = vector.load %arg6[%138, %c0_59, %c0_60] : memref<8x16x128xf32, #tpu.memory_space<vmem>>, vector<1x16x128xf32>
    %140 = vector.shape_cast %139 : vector<1x16x128xf32> to vector<16x128xf32>
    %141 = vector.shape_cast %137 : vector<16x128xf32> to vector<1x16x128xf32>
    tpu.vector_store %arg6[%138, %c0_59, %c0_60], %141 {strides = array<i32>} : memref<8x16x128xf32, #tpu.memory_space<vmem>>, vector<1x16x128xf32>,
    %c3_i32 = arith.constant 3 : i32
    %c16_i32_61 = arith.constant 16 : i32
    %142 = arith.muli %c3_i32, %c16_i32_61 : i32
    %143 = tpu.assume_multiple %142, 16 : i32
    %144 = arith.index_cast %143 : i32 to index
    %c0_62 = arith.constant 0 : index
    %145 = vector.load %arg11[%144, %c0_62] : memref<128x512xf32, #tpu.memory_space<vmem>>, vector<16x512xf32>
    %146 = arith.truncf %137 : vector<16x128xf32> to vector<16x128xbf16>
    %c0_63 = arith.constant 0 : index
    %c0_64 = arith.constant 0 : index
    %147 = vector.load %arg9[%c0_63, %c0_64] : memref<128x512xbf16, #tpu.memory_space<vmem>>, vector<128x512xbf16>
    %cst_65 = arith.constant dense<0.000000e+00> : vector<16x512xf32>
    %148 = tpu.matmul %146, %147, %cst_65 {dimension_numbers = #tpu.dot_dimension_numbers<[1], [0], [0], [1], [0, 0, 1, 1], [], []>} : vector<16x128xbf16>, vector<128x512xbf16>, vector<16x512xf32> -> vector<16x512xf32>
    %149 = arith.addf %145, %148 : vector<16x512xf32>
    %150 = vector.extract_strided_slice %149 {offsets = [0, 0], sizes = [16, 128], strides = [1, 1]} : vector<16x512xf32> to vector<16x128xf32>
    %cst_66 = arith.constant 5.000000e-01 : f32
    %151 = vector.broadcast %cst_66 : f32 to vector<16x128xf32>
    %152 = arith.mulf %151, %150 : vector<16x128xf32>
    %153 = math.tanh %152 : vector<16x128xf32>
    %cst_67 = arith.constant 1.000000e+00 : f32
    %154 = vector.broadcast %cst_67 : f32 to vector<16x128xf32>
    %155 = arith.addf %153, %154 : vector<16x128xf32>
    %cst_68 = arith.constant 5.000000e-01 : f32
    %156 = vector.broadcast %cst_68 : f32 to vector<16x128xf32>
    %157 = arith.mulf %156, %155 : vector<16x128xf32>
    %158 = vector.extract_strided_slice %149 {offsets = [0, 128], sizes = [16, 128], strides = [1, 1]} : vector<16x512xf32> to vector<16x128xf32>
    %cst_69 = arith.constant 5.000000e-01 : f32
    %159 = vector.broadcast %cst_69 : f32 to vector<16x128xf32>
    %160 = arith.mulf %159, %158 : vector<16x128xf32>
    %161 = math.tanh %160 : vector<16x128xf32>
    %cst_70 = arith.constant 1.000000e+00 : f32
    %162 = vector.broadcast %cst_70 : f32 to vector<16x128xf32>
    %163 = arith.addf %161, %162 : vector<16x128xf32>
    %cst_71 = arith.constant 5.000000e-01 : f32
    %164 = vector.broadcast %cst_71 : f32 to vector<16x128xf32>
    %165 = arith.mulf %164, %163 : vector<16x128xf32>
    %166 = vector.extract_strided_slice %149 {offsets = [0, 256], sizes = [16, 128], strides = [1, 1]} : vector<16x512xf32> to vector<16x128xf32>
    %167 = math.tanh %166 : vector<16x128xf32>
    %168 = vector.extract_strided_slice %149 {offsets = [0, 384], sizes = [16, 128], strides = [1, 1]} : vector<16x512xf32> to vector<16x128xf32>
    %cst_72 = arith.constant 5.000000e-01 : f32
    %169 = vector.broadcast %cst_72 : f32 to vector<16x128xf32>
    %170 = arith.mulf %169, %168 : vector<16x128xf32>
    %171 = math.tanh %170 : vector<16x128xf32>
    %cst_73 = arith.constant 1.000000e+00 : f32
    %172 = vector.broadcast %cst_73 : f32 to vector<16x128xf32>
    %173 = arith.addf %171, %172 : vector<16x128xf32>
    %cst_74 = arith.constant 5.000000e-01 : f32
    %174 = vector.broadcast %cst_74 : f32 to vector<16x128xf32>
    %175 = arith.mulf %174, %173 : vector<16x128xf32>
    %176 = arith.mulf %157, %135 : vector<16x128xf32>
    %177 = arith.mulf %165, %167 : vector<16x128xf32>
    %178 = arith.addf %176, %177 : vector<16x128xf32>
    %179 = math.tanh %178 : vector<16x128xf32>
    %180 = arith.mulf %175, %179 : vector<16x128xf32>
    %181 = arith.index_cast %c3_i32 : i32 to index
    %c0_75 = arith.constant 0 : index
    %c0_76 = arith.constant 0 : index
    %182 = vector.load %arg6[%181, %c0_75, %c0_76] : memref<8x16x128xf32, #tpu.memory_space<vmem>>, vector<1x16x128xf32>
    %183 = vector.shape_cast %182 : vector<1x16x128xf32> to vector<16x128xf32>
    %184 = vector.shape_cast %180 : vector<16x128xf32> to vector<1x16x128xf32>
    tpu.vector_store %arg6[%181, %c0_75, %c0_76], %184 {strides = array<i32>} : memref<8x16x128xf32, #tpu.memory_space<vmem>>, vector<1x16x128xf32>,
    %c4_i32 = arith.constant 4 : i32
    %c16_i32_77 = arith.constant 16 : i32
    %185 = arith.muli %c4_i32, %c16_i32_77 : i32
    %186 = tpu.assume_multiple %185, 16 : i32
    %187 = arith.index_cast %186 : i32 to index
    %c0_78 = arith.constant 0 : index
    %188 = vector.load %arg11[%187, %c0_78] : memref<128x512xf32, #tpu.memory_space<vmem>>, vector<16x512xf32>
    %189 = arith.truncf %180 : vector<16x128xf32> to vector<16x128xbf16>
    %c0_79 = arith.constant 0 : index
    %c0_80 = arith.constant 0 : index
    %190 = vector.load %arg9[%c0_79, %c0_80] : memref<128x512xbf16, #tpu.memory_space<vmem>>, vector<128x512xbf16>
    %cst_81 = arith.constant dense<0.000000e+00> : vector<16x512xf32>
    %191 = tpu.matmul %189, %190, %cst_81 {dimension_numbers = #tpu.dot_dimension_numbers<[1], [0], [0], [1], [0, 0, 1, 1], [], []>} : vector<16x128xbf16>, vector<128x512xbf16>, vector<16x512xf32> -> vector<16x512xf32>
    %192 = arith.addf %188, %191 : vector<16x512xf32>
    %193 = vector.extract_strided_slice %192 {offsets = [0, 0], sizes = [16, 128], strides = [1, 1]} : vector<16x512xf32> to vector<16x128xf32>
    %cst_82 = arith.constant 5.000000e-01 : f32
    %194 = vector.broadcast %cst_82 : f32 to vector<16x128xf32>
    %195 = arith.mulf %194, %193 : vector<16x128xf32>
    %196 = math.tanh %195 : vector<16x128xf32>
    %cst_83 = arith.constant 1.000000e+00 : f32
    %197 = vector.broadcast %cst_83 : f32 to vector<16x128xf32>
    %198 = arith.addf %196, %197 : vector<16x128xf32>
    %cst_84 = arith.constant 5.000000e-01 : f32
    %199 = vector.broadcast %cst_84 : f32 to vector<16x128xf32>
    %200 = arith.mulf %199, %198 : vector<16x128xf32>
    %201 = vector.extract_strided_slice %192 {offsets = [0, 128], sizes = [16, 128], strides = [1, 1]} : vector<16x512xf32> to vector<16x128xf32>
    %cst_85 = arith.constant 5.000000e-01 : f32
    %202 = vector.broadcast %cst_85 : f32 to vector<16x128xf32>
    %203 = arith.mulf %202, %201 : vector<16x128xf32>
    %204 = math.tanh %203 : vector<16x128xf32>
    %cst_86 = arith.constant 1.000000e+00 : f32
    %205 = vector.broadcast %cst_86 : f32 to vector<16x128xf32>
    %206 = arith.addf %204, %205 : vector<16x128xf32>
    %cst_87 = arith.constant 5.000000e-01 : f32
    %207 = vector.broadcast %cst_87 : f32 to vector<16x128xf32>
    %208 = arith.mulf %207, %206 : vector<16x128xf32>
    %209 = vector.extract_strided_slice %192 {offsets = [0, 256], sizes = [16, 128], strides = [1, 1]} : vector<16x512xf32> to vector<16x128xf32>
    %210 = math.tanh %209 : vector<16x128xf32>
    %211 = vector.extract_strided_slice %192 {offsets = [0, 384], sizes = [16, 128], strides = [1, 1]} : vector<16x512xf32> to vector<16x128xf32>
    %cst_88 = arith.constant 5.000000e-01 : f32
    %212 = vector.broadcast %cst_88 : f32 to vector<16x128xf32>
    %213 = arith.mulf %212, %211 : vector<16x128xf32>
    %214 = math.tanh %213 : vector<16x128xf32>
    %cst_89 = arith.constant 1.000000e+00 : f32
    %215 = vector.broadcast %cst_89 : f32 to vector<16x128xf32>
    %216 = arith.addf %214, %215 : vector<16x128xf32>
    %cst_90 = arith.constant 5.000000e-01 : f32
    %217 = vector.broadcast %cst_90 : f32 to vector<16x128xf32>
    %218 = arith.mulf %217, %216 : vector<16x128xf32>
    %219 = arith.mulf %200, %178 : vector<16x128xf32>
    %220 = arith.mulf %208, %210 : vector<16x128xf32>
    %221 = arith.addf %219, %220 : vector<16x128xf32>
    %222 = math.tanh %221 : vector<16x128xf32>
    %223 = arith.mulf %218, %222 : vector<16x128xf32>
    %224 = arith.index_cast %c4_i32 : i32 to index
    %c0_91 = arith.constant 0 : index
    %c0_92 = arith.constant 0 : index
    %225 = vector.load %arg6[%224, %c0_91, %c0_92] : memref<8x16x128xf32, #tpu.memory_space<vmem>>, vector<1x16x128xf32>
    %226 = vector.shape_cast %225 : vector<1x16x128xf32> to vector<16x128xf32>
    %227 = vector.shape_cast %223 : vector<16x128xf32> to vector<1x16x128xf32>
    tpu.vector_store %arg6[%224, %c0_91, %c0_92], %227 {strides = array<i32>} : memref<8x16x128xf32, #tpu.memory_space<vmem>>, vector<1x16x128xf32>,
    %c5_i32 = arith.constant 5 : i32
    %c16_i32_93 = arith.constant 16 : i32
    %228 = arith.muli %c5_i32, %c16_i32_93 : i32
    %229 = tpu.assume_multiple %228, 16 : i32
    %230 = arith.index_cast %229 : i32 to index
    %c0_94 = arith.constant 0 : index
    %231 = vector.load %arg11[%230, %c0_94] : memref<128x512xf32, #tpu.memory_space<vmem>>, vector<16x512xf32>
    %232 = arith.truncf %223 : vector<16x128xf32> to vector<16x128xbf16>
    %c0_95 = arith.constant 0 : index
    %c0_96 = arith.constant 0 : index
    %233 = vector.load %arg9[%c0_95, %c0_96] : memref<128x512xbf16, #tpu.memory_space<vmem>>, vector<128x512xbf16>
    %cst_97 = arith.constant dense<0.000000e+00> : vector<16x512xf32>
    %234 = tpu.matmul %232, %233, %cst_97 {dimension_numbers = #tpu.dot_dimension_numbers<[1], [0], [0], [1], [0, 0, 1, 1], [], []>} : vector<16x128xbf16>, vector<128x512xbf16>, vector<16x512xf32> -> vector<16x512xf32>
    %235 = arith.addf %231, %234 : vector<16x512xf32>
    %236 = vector.extract_strided_slice %235 {offsets = [0, 0], sizes = [16, 128], strides = [1, 1]} : vector<16x512xf32> to vector<16x128xf32>
    %cst_98 = arith.constant 5.000000e-01 : f32
    %237 = vector.broadcast %cst_98 : f32 to vector<16x128xf32>
    %238 = arith.mulf %237, %236 : vector<16x128xf32>
    %239 = math.tanh %238 : vector<16x128xf32>
    %cst_99 = arith.constant 1.000000e+00 : f32
    %240 = vector.broadcast %cst_99 : f32 to vector<16x128xf32>
    %241 = arith.addf %239, %240 : vector<16x128xf32>
    %cst_100 = arith.constant 5.000000e-01 : f32
    %242 = vector.broadcast %cst_100 : f32 to vector<16x128xf32>
    %243 = arith.mulf %242, %241 : vector<16x128xf32>
    %244 = vector.extract_strided_slice %235 {offsets = [0, 128], sizes = [16, 128], strides = [1, 1]} : vector<16x512xf32> to vector<16x128xf32>
    %cst_101 = arith.constant 5.000000e-01 : f32
    %245 = vector.broadcast %cst_101 : f32 to vector<16x128xf32>
    %246 = arith.mulf %245, %244 : vector<16x128xf32>
    %247 = math.tanh %246 : vector<16x128xf32>
    %cst_102 = arith.constant 1.000000e+00 : f32
    %248 = vector.broadcast %cst_102 : f32 to vector<16x128xf32>
    %249 = arith.addf %247, %248 : vector<16x128xf32>
    %cst_103 = arith.constant 5.000000e-01 : f32
    %250 = vector.broadcast %cst_103 : f32 to vector<16x128xf32>
    %251 = arith.mulf %250, %249 : vector<16x128xf32>
    %252 = vector.extract_strided_slice %235 {offsets = [0, 256], sizes = [16, 128], strides = [1, 1]} : vector<16x512xf32> to vector<16x128xf32>
    %253 = math.tanh %252 : vector<16x128xf32>
    %254 = vector.extract_strided_slice %235 {offsets = [0, 384], sizes = [16, 128], strides = [1, 1]} : vector<16x512xf32> to vector<16x128xf32>
    %cst_104 = arith.constant 5.000000e-01 : f32
    %255 = vector.broadcast %cst_104 : f32 to vector<16x128xf32>
    %256 = arith.mulf %255, %254 : vector<16x128xf32>
    %257 = math.tanh %256 : vector<16x128xf32>
    %cst_105 = arith.constant 1.000000e+00 : f32
    %258 = vector.broadcast %cst_105 : f32 to vector<16x128xf32>
    %259 = arith.addf %257, %258 : vector<16x128xf32>
    %cst_106 = arith.constant 5.000000e-01 : f32
    %260 = vector.broadcast %cst_106 : f32 to vector<16x128xf32>
    %261 = arith.mulf %260, %259 : vector<16x128xf32>
    %262 = arith.mulf %243, %221 : vector<16x128xf32>
    %263 = arith.mulf %251, %253 : vector<16x128xf32>
    %264 = arith.addf %262, %263 : vector<16x128xf32>
    %265 = math.tanh %264 : vector<16x128xf32>
    %266 = arith.mulf %261, %265 : vector<16x128xf32>
    %267 = arith.index_cast %c5_i32 : i32 to index
    %c0_107 = arith.constant 0 : index
    %c0_108 = arith.constant 0 : index
    %268 = vector.load %arg6[%267, %c0_107, %c0_108] : memref<8x16x128xf32, #tpu.memory_space<vmem>>, vector<1x16x128xf32>
    %269 = vector.shape_cast %268 : vector<1x16x128xf32> to vector<16x128xf32>
    %270 = vector.shape_cast %266 : vector<16x128xf32> to vector<1x16x128xf32>
    tpu.vector_store %arg6[%267, %c0_107, %c0_108], %270 {strides = array<i32>} : memref<8x16x128xf32, #tpu.memory_space<vmem>>, vector<1x16x128xf32>,
    %c6_i32 = arith.constant 6 : i32
    %c16_i32_109 = arith.constant 16 : i32
    %271 = arith.muli %c6_i32, %c16_i32_109 : i32
    %272 = tpu.assume_multiple %271, 16 : i32
    %273 = arith.index_cast %272 : i32 to index
    %c0_110 = arith.constant 0 : index
    %274 = vector.load %arg11[%273, %c0_110] : memref<128x512xf32, #tpu.memory_space<vmem>>, vector<16x512xf32>
    %275 = arith.truncf %266 : vector<16x128xf32> to vector<16x128xbf16>
    %c0_111 = arith.constant 0 : index
    %c0_112 = arith.constant 0 : index
    %276 = vector.load %arg9[%c0_111, %c0_112] : memref<128x512xbf16, #tpu.memory_space<vmem>>, vector<128x512xbf16>
    %cst_113 = arith.constant dense<0.000000e+00> : vector<16x512xf32>
    %277 = tpu.matmul %275, %276, %cst_113 {dimension_numbers = #tpu.dot_dimension_numbers<[1], [0], [0], [1], [0, 0, 1, 1], [], []>} : vector<16x128xbf16>, vector<128x512xbf16>, vector<16x512xf32> -> vector<16x512xf32>
    %278 = arith.addf %274, %277 : vector<16x512xf32>
    %279 = vector.extract_strided_slice %278 {offsets = [0, 0], sizes = [16, 128], strides = [1, 1]} : vector<16x512xf32> to vector<16x128xf32>
    %cst_114 = arith.constant 5.000000e-01 : f32
    %280 = vector.broadcast %cst_114 : f32 to vector<16x128xf32>
    %281 = arith.mulf %280, %279 : vector<16x128xf32>
    %282 = math.tanh %281 : vector<16x128xf32>
    %cst_115 = arith.constant 1.000000e+00 : f32
    %283 = vector.broadcast %cst_115 : f32 to vector<16x128xf32>
    %284 = arith.addf %282, %283 : vector<16x128xf32>
    %cst_116 = arith.constant 5.000000e-01 : f32
    %285 = vector.broadcast %cst_116 : f32 to vector<16x128xf32>
    %286 = arith.mulf %285, %284 : vector<16x128xf32>
    %287 = vector.extract_strided_slice %278 {offsets = [0, 128], sizes = [16, 128], strides = [1, 1]} : vector<16x512xf32> to vector<16x128xf32>
    %cst_117 = arith.constant 5.000000e-01 : f32
    %288 = vector.broadcast %cst_117 : f32 to vector<16x128xf32>
    %289 = arith.mulf %288, %287 : vector<16x128xf32>
    %290 = math.tanh %289 : vector<16x128xf32>
    %cst_118 = arith.constant 1.000000e+00 : f32
    %291 = vector.broadcast %cst_118 : f32 to vector<16x128xf32>
    %292 = arith.addf %290, %291 : vector<16x128xf32>
    %cst_119 = arith.constant 5.000000e-01 : f32
    %293 = vector.broadcast %cst_119 : f32 to vector<16x128xf32>
    %294 = arith.mulf %293, %292 : vector<16x128xf32>
    %295 = vector.extract_strided_slice %278 {offsets = [0, 256], sizes = [16, 128], strides = [1, 1]} : vector<16x512xf32> to vector<16x128xf32>
    %296 = math.tanh %295 : vector<16x128xf32>
    %297 = vector.extract_strided_slice %278 {offsets = [0, 384], sizes = [16, 128], strides = [1, 1]} : vector<16x512xf32> to vector<16x128xf32>
    %cst_120 = arith.constant 5.000000e-01 : f32
    %298 = vector.broadcast %cst_120 : f32 to vector<16x128xf32>
    %299 = arith.mulf %298, %297 : vector<16x128xf32>
    %300 = math.tanh %299 : vector<16x128xf32>
    %cst_121 = arith.constant 1.000000e+00 : f32
    %301 = vector.broadcast %cst_121 : f32 to vector<16x128xf32>
    %302 = arith.addf %300, %301 : vector<16x128xf32>
    %cst_122 = arith.constant 5.000000e-01 : f32
    %303 = vector.broadcast %cst_122 : f32 to vector<16x128xf32>
    %304 = arith.mulf %303, %302 : vector<16x128xf32>
    %305 = arith.mulf %286, %264 : vector<16x128xf32>
    %306 = arith.mulf %294, %296 : vector<16x128xf32>
    %307 = arith.addf %305, %306 : vector<16x128xf32>
    %308 = math.tanh %307 : vector<16x128xf32>
    %309 = arith.mulf %304, %308 : vector<16x128xf32>
    %310 = arith.index_cast %c6_i32 : i32 to index
    %c0_123 = arith.constant 0 : index
    %c0_124 = arith.constant 0 : index
    %311 = vector.load %arg6[%310, %c0_123, %c0_124] : memref<8x16x128xf32, #tpu.memory_space<vmem>>, vector<1x16x128xf32>
    %312 = vector.shape_cast %311 : vector<1x16x128xf32> to vector<16x128xf32>
    %313 = vector.shape_cast %309 : vector<16x128xf32> to vector<1x16x128xf32>
    tpu.vector_store %arg6[%310, %c0_123, %c0_124], %313 {strides = array<i32>} : memref<8x16x128xf32, #tpu.memory_space<vmem>>, vector<1x16x128xf32>,
    %c7_i32 = arith.constant 7 : i32
    %c16_i32_125 = arith.constant 16 : i32
    %314 = arith.muli %c7_i32, %c16_i32_125 : i32
    %315 = tpu.assume_multiple %314, 16 : i32
    %316 = arith.index_cast %315 : i32 to index
    %c0_126 = arith.constant 0 : index
    %317 = vector.load %arg11[%316, %c0_126] : memref<128x512xf32, #tpu.memory_space<vmem>>, vector<16x512xf32>
    %318 = arith.truncf %309 : vector<16x128xf32> to vector<16x128xbf16>
    %c0_127 = arith.constant 0 : index
    %c0_128 = arith.constant 0 : index
    %319 = vector.load %arg9[%c0_127, %c0_128] : memref<128x512xbf16, #tpu.memory_space<vmem>>, vector<128x512xbf16>
    %cst_129 = arith.constant dense<0.000000e+00> : vector<16x512xf32>
    %320 = tpu.matmul %318, %319, %cst_129 {dimension_numbers = #tpu.dot_dimension_numbers<[1], [0], [0], [1], [0, 0, 1, 1], [], []>} : vector<16x128xbf16>, vector<128x512xbf16>, vector<16x512xf32> -> vector<16x512xf32>
    %321 = arith.addf %317, %320 : vector<16x512xf32>
    %322 = vector.extract_strided_slice %321 {offsets = [0, 0], sizes = [16, 128], strides = [1, 1]} : vector<16x512xf32> to vector<16x128xf32>
    %cst_130 = arith.constant 5.000000e-01 : f32
    %323 = vector.broadcast %cst_130 : f32 to vector<16x128xf32>
    %324 = arith.mulf %323, %322 : vector<16x128xf32>
    %325 = math.tanh %324 : vector<16x128xf32>
    %cst_131 = arith.constant 1.000000e+00 : f32
    %326 = vector.broadcast %cst_131 : f32 to vector<16x128xf32>
    %327 = arith.addf %325, %326 : vector<16x128xf32>
    %cst_132 = arith.constant 5.000000e-01 : f32
    %328 = vector.broadcast %cst_132 : f32 to vector<16x128xf32>
    %329 = arith.mulf %328, %327 : vector<16x128xf32>
    %330 = vector.extract_strided_slice %321 {offsets = [0, 128], sizes = [16, 128], strides = [1, 1]} : vector<16x512xf32> to vector<16x128xf32>
    %cst_133 = arith.constant 5.000000e-01 : f32
    %331 = vector.broadcast %cst_133 : f32 to vector<16x128xf32>
    %332 = arith.mulf %331, %330 : vector<16x128xf32>
    %333 = math.tanh %332 : vector<16x128xf32>
    %cst_134 = arith.constant 1.000000e+00 : f32
    %334 = vector.broadcast %cst_134 : f32 to vector<16x128xf32>
    %335 = arith.addf %333, %334 : vector<16x128xf32>
    %cst_135 = arith.constant 5.000000e-01 : f32
    %336 = vector.broadcast %cst_135 : f32 to vector<16x128xf32>
    %337 = arith.mulf %336, %335 : vector<16x128xf32>
    %338 = vector.extract_strided_slice %321 {offsets = [0, 256], sizes = [16, 128], strides = [1, 1]} : vector<16x512xf32> to vector<16x128xf32>
    %339 = math.tanh %338 : vector<16x128xf32>
    %340 = vector.extract_strided_slice %321 {offsets = [0, 384], sizes = [16, 128], strides = [1, 1]} : vector<16x512xf32> to vector<16x128xf32>
    %cst_136 = arith.constant 5.000000e-01 : f32
    %341 = vector.broadcast %cst_136 : f32 to vector<16x128xf32>
    %342 = arith.mulf %341, %340 : vector<16x128xf32>
    %343 = math.tanh %342 : vector<16x128xf32>
    %cst_137 = arith.constant 1.000000e+00 : f32
    %344 = vector.broadcast %cst_137 : f32 to vector<16x128xf32>
    %345 = arith.addf %343, %344 : vector<16x128xf32>
    %cst_138 = arith.constant 5.000000e-01 : f32
    %346 = vector.broadcast %cst_138 : f32 to vector<16x128xf32>
    %347 = arith.mulf %346, %345 : vector<16x128xf32>
    %348 = arith.mulf %329, %307 : vector<16x128xf32>
    %349 = arith.mulf %337, %339 : vector<16x128xf32>
    %350 = arith.addf %348, %349 : vector<16x128xf32>
    %351 = math.tanh %350 : vector<16x128xf32>
    %352 = arith.mulf %347, %351 : vector<16x128xf32>
    %353 = arith.index_cast %c7_i32 : i32 to index
    %c0_139 = arith.constant 0 : index
    %c0_140 = arith.constant 0 : index
    %354 = vector.load %arg6[%353, %c0_139, %c0_140] : memref<8x16x128xf32, #tpu.memory_space<vmem>>, vector<1x16x128xf32>
    %355 = vector.shape_cast %354 : vector<1x16x128xf32> to vector<16x128xf32>
    %356 = vector.shape_cast %352 : vector<16x128xf32> to vector<1x16x128xf32>
    tpu.vector_store %arg6[%353, %c0_139, %c0_140], %356 {strides = array<i32>} : memref<8x16x128xf32, #tpu.memory_space<vmem>>, vector<1x16x128xf32>,
    %c8_i32 = arith.constant 8 : i32
    %c0_141 = arith.constant 0 : index
    %c0_142 = arith.constant 0 : index
    %357 = vector.load %arg12[%c0_141, %c0_142] : memref<16x128xf32, #tpu.memory_space<vmem>>, vector<16x128xf32>
    tpu.vector_store %arg12[%c0_141, %c0_142], %352 {strides = array<i32>} : memref<16x128xf32, #tpu.memory_space<vmem>>, vector<16x128xf32>,
    %c0_143 = arith.constant 0 : index
    %c0_144 = arith.constant 0 : index
    %358 = vector.load %arg13[%c0_143, %c0_144] : memref<16x128xf32, #tpu.memory_space<vmem>>, vector<16x128xf32>
    tpu.vector_store %arg13[%c0_143, %c0_144], %350 {strides = array<i32>} : memref<16x128xf32, #tpu.memory_space<vmem>>, vector<16x128xf32>,
    %c0_145 = arith.constant 0 : index
    %c0_146 = arith.constant 0 : index
    %359 = vector.load %arg7[%c0_145, %c0_146] : memref<16x128xf32, #tpu.memory_space<vmem>>, vector<16x128xf32>
    tpu.vector_store %arg7[%c0_145, %c0_146], %350 {strides = array<i32>} : memref<16x128xf32, #tpu.memory_space<vmem>>, vector<16x128xf32>,
    return
  }
  func.func @transform_0(%arg0: i32, %arg1: i32) -> (i32, i32, i32) {
    %c0_i32 = arith.constant 0 : i32
    %c0_i32_0 = arith.constant 0 : i32
    return %arg0, %arg1, %c0_i32 : i32, i32, i32
  }
  func.func @transform_4(%arg0: i32, %arg1: i32) -> (i32, i32, i32) {
    %c0_i32 = arith.constant 0 : i32
    %c0_i32_0 = arith.constant 0 : i32
    return %arg1, %arg0, %c0_i32 : i32, i32, i32
  }
  func.func @transform_5(%arg0: i32, %arg1: i32) -> (i32, i32) {
    %c0_i32 = arith.constant 0 : i32
    %c0_i32_0 = arith.constant 0 : i32
    return %arg0, %c0_i32 : i32, i32
  }
}

</mosaic_0001>

<bundles_post_ra>
// kernel: tpu_custom_call.1
= control target key start
LH: loop header
LB: loop body
LE: loop exit
PB: predicated region body
PF: predicated region fallthrough
CT: control target
= control target key end

     0   :  { %11 = vsyncpa [#allocation10], 0  ;;  %s3150_s0 = inlined_call_operand.vmem [shape: bf16[1,128,4], index: 0, kind: input, shape index: {}]   ;;  %s3151_s1 = inlined_call_operand.vmem [shape: bf16[4,512], index: 1, kind: input, shape index: {}]   ;;  %s3152_s2 = inlined_call_operand.hbm [shape: bf16[128,512], index: 2, kind: input, shape index: {}]   ;;  %s3153_s3 = inlined_call_operand.vmem [shape: f32[1,512], index: 3, kind: input, shape index: {}]   ;;  %s3154_s4 = inlined_call_operand.hbm [shape: f32[8,16,128], index: 4, kind: output, shape index: {0}]   ;;  %s3155_s5 = inlined_call_operand.hbm [shape: f32[16,128], index: 5, kind: output, shape index: {1}]  }
   0x1   :  { %12 = vsyncpa [#allocation12], 0 }
   0x2   :  { %v52_v0 = vld [vmem:[%s3151_s1] sm:$0xff] }
   0x3   :  { %61 = vsyncadd [#allocation8], 128  ;;  %s67_s20 = sld [smem:[#allocation0]]   ;;  %s2482_s21 = smov [#allocation3]  }
   0x4   :  { %s75_s22 = sshll.u32 %s2482_s21, 4  ;;  %s2483_s23 = smov 512   ;;  %s76_s22 = int_to_ptr.vmem [resolvable:$true] %s75_s22 }
   0x5   :  { %79 = sst [smem:[#allocation15]] %s2483_s23  ;;  %s2484_s24 = smov 4  }
   0x6   :  { %81 = sst [smem:[#allocation15 + $0x1]] %s2483_s23  ;;  %s2485_s25 = smov 64  }
   0x7   :  { %83 = sst [smem:[#allocation15 + $0x2]] %s2484_s24  ;;  %s2486_s27 = smov 128  }
   0x8   :  { %85 = sst [smem:[#allocation15 + $0x3]] %s2485_s25  ;;  %s2487_s29 = smov 2  }
   0x9   :  { %s2085_s26 = sshll.u32 %s67_s20, 26  ;;  %87 = sst [smem:[#allocation15 + $0x4]] %s2486_s27 }
   0xa   :  { %s2086_s28 = sadd.s32 134217728, %s2085_s26  ;;  %89 = sst [smem:[#allocation15 + $0x5]] %s2487_s29 }
   0xb   :  { %s2488_s30 = smov 256   ;;  %93 = sst [smem:[#allocation15 + $0x7]] %s2485_s25 }
   0xc   :  { %91 = sst [smem:[#allocation15 + $0x6]] %s2488_s30  ;;  %s2489_s1 = smov [#allocation8 + $0x1]  }
   0xd   :  { %95 = sst [smem:[#allocation15 + $0x8]] %s2484_s24  ;;  %s2490_s6 = smov [#allocation14]  }
   0xe   :  { %97 = dma.general %s3152_s2, 4096, %s76_s22, %s2489_s1, %s2490_s6, [#allocation15], %s2086_s28, 0  }
   0xf   :  { %v116_v1 = vld [vmem:[%s3153_s3] sm:$0xf] }
  0x10   :  { %117 = vst [vmem:[#allocation4] sm:$0xf] %v116_v1 }
  0x11   :  { %142 = vsyncadd [#allocation8 + $0x2], 64 }
  0x12   :  { %2472 = dma.done.wait [#allocation8], 128 }
  0x13   :  { %2473 = vsyncadd [#allocation8], 4294967168 }
  0x14   :  { %2474 = dma.done.wait [#allocation8 + $0x1], 4096 }
  0x15   :  { %2475 = vsyncadd [#allocation8 + $0x1], 4294963200 }
  0x16   :  { %2476 = dma.done.wait [#allocation8 + $0x2], 64 }
  0x17   :  { %2477 = vsyncadd [#allocation8 + $0x2], 4294967232  ;;  %v177_v2 = vlaneseq  ;;  %v2491_v3 = vmov 1983009808   ;;  %v2492_v6 = vmov 0   ;;  %v238_v8 = vcombine.high %v52_v0, %v52_v0  ;;  %v2542_v16 = vld [vmem:[#allocation3 + $0x8] sm:$0xff] }
  0x18   :  { %v240_v4 = vunpack.c.l.s4 %v2491_v3  ;;  %325 = vmatprep.mubr.bf16.mxu0 %v2492_v6  ;;  %438 = vmatprep.mubr.bf16.mxu1 %v2492_v6  ;;  %vm280_vm0 = vcmask 1041408   ;;  %v2544_v17 = vld [vmem:[#allocation3 + $0x18] sm:$0xff]  ;;  %v2260_v18 = vld [vmem:[%s3150_s0] sm:$0xff]   ;;  %vm255_vm1 = vcmask 31744   ;;  %v2550_v19 = vld [vmem:[#allocation3] sm:$0xff]  ;;  %v2493_v56 = vmov 0.0|0.0  }
  0x19   :  { %v2537_v5 = vshrl.u32 %v177_v2, 7  ;;  %v2553_v20 = vld [vmem:[#allocation3 + $0x28] sm:$0xff]  ;;  %v2557_v21 = vld [vmem:[#allocation3 + $0x10] sm:$0xff]  ;;  %v2561_v22 = vld [vmem:[#allocation3 + $0x38] sm:$0xff] }
  0x1a   :  { %v241_v7 = vunpack.c.0.s8 %v240_v4  ;;  %v2565_v23 = vld [vmem:[#allocation3 + $0x20] sm:$0xff]  ;;  %v2568_v24 = vld [vmem:[#allocation3 + $0x48] sm:$0xff]  ;;  %v2261_v25 = vld [vmem:[%s3150_s0 + $0x8] sm:$0xff]  }
  0x1b   :  { %v2574_v26 = vld [vmem:[#allocation3 + $0x30] sm:$0xff]  ;;  %v2579_v27 = vld [vmem:[#allocation3 + $0x40] sm:$0xff]  ;;  %v2581_v28 = vld [vmem:[#allocation3 + $0x58] sm:$0xff]  ;;  %v179_v57 = vsub.s32 0, %v2537_v5  ;;  %v183_v59 = vsub.s32 1, %v2537_v5  ;;  %v187_v61 = vsub.s32 2, %v2537_v5 }
  0x1c   :  { %v244_v9 = vsub.s32 %v241_v7, %v2537_v5  ;;  %v2585_v29 = vld [vmem:[#allocation3 + $0x68] sm:$0xff]  ;;  %v2587_v30 = vld [vmem:[#allocation3 + $0x50] sm:$0xff]  ;;  %v2591_v31 = vld [vmem:[#allocation3 + $0x78] sm:$0xff]  ;;  %v191_v2 = vsub.s32 3, %v2537_v5 }
  0x1d   :  { %v2597_v32 = vld [vmem:[#allocation3 + $0x60] sm:$0xff]  ;;  %v2603_v34 = vld [vmem:[#allocation3 + $0x88] sm:$0xff]  ;;  %v2605_v35 = vld [vmem:[#allocation3 + $0x70] sm:$0xff] }
  0x1e   :  { %v245_v10 = vrot.slane %v52_v0, %v244_v9  ;;  %v252_v11 = vrot.slane %v238_v8, %v244_v9  ;;  %v2262_v33 = vld [vmem:[%s3150_s0 + $0x10] sm:$0xff]   ;;  %v2612_v37 = vld [vmem:[#allocation3 + $0x98] sm:$0xff]  ;;  %v2616_v38 = vld [vmem:[#allocation3 + $0xa8] sm:$0xff] }
  0x1f   :  { %v2610_v36 = vld [vmem:[#allocation3 + $0x80] sm:$0xff]  ;;  %v2618_v39 = vld [vmem:[#allocation3 + $0x90] sm:$0xff]  ;;  %v2622_v40 = vld [vmem:[#allocation3 + $0xb8] sm:$0xff] }
  0x20   :  { %v253_v12 = vcombine.high %v245_v10, %v245_v10  ;;  %v254_v13 = vcombine.high %v252_v11, %v252_v11  ;;  %v282_v14 = vsel %vm280_vm0, %v245_v10, 0  ;;  %v288_v15 = vsel %vm280_vm0, %v252_v11, 0  ;;  %v2628_v41 = vld [vmem:[#allocation3 + $0xa0] sm:$0xff]  ;;  %v2263_v42 = vld [vmem:[%s3150_s0 + $0x18] sm:$0xff]   ;;  %v2636_v44 = vld [vmem:[#allocation3 + $0xb0] sm:$0xff] }
  0x21   :  { %v2634_v43 = vld [vmem:[#allocation3 + $0xc8] sm:$0xff]  ;;  %v2641_v45 = vld [vmem:[#allocation3 + $0xc0] sm:$0xff]  ;;  %v2643_v46 = vld [vmem:[#allocation3 + $0xd8] sm:$0xff] }
  0x22   :  { %2095 = vmatprep.subr.msk.bf16.mxu0 %vm280_vm0, %v253_v12  ;;  %2104 = vmatprep.subr.msk.bf16.mxu1 %vm280_vm0, %v254_v13  ;;  %v2647_v47 = vld [vmem:[#allocation3 + $0xe8] sm:$0xff]  ;;  %v2649_v48 = vld [vmem:[#allocation3 + $0xd0] sm:$0xff]  ;;  %v2653_v49 = vld [vmem:[#allocation3 + $0xf8] sm:$0xff] }
  0x23   :  { %294 = vmatpush1.bf16.msra.mxu0 %v282_v14  ;;  %407 = vmatpush1.bf16.msra.mxu1 %v288_v15  ;;  %v2659_v50 = vld [vmem:[#allocation3 + $0xe0] sm:$0xff]  ;;  %v2264_v51 = vld [vmem:[%s3150_s0 + $0x20] sm:$0xff]   ;;  %v2265_v53 = vld [vmem:[%s3150_s0 + $0x28] sm:$0xff]  }
  0x24   :  { %631 = vmatprep.subr.bf16.mxu0 %v2542_v16  ;;  %674 = vmatprep.subr.bf16.mxu1 %v2544_v17  ;;  %v2665_v52 = vld [vmem:[#allocation3 + $0xf0] sm:$0xff]  ;;  %v2266_v54 = vld [vmem:[%s3150_s0 + $0x30] sm:$0xff]   ;;  %v2267_v55 = vld [vmem:[%s3150_s0 + $0x38] sm:$0xff]   ;;  %s2494_s0 = smov [#allocation11]  }
  0x25   :  { %v175_v58 = vld [vmem:[#allocation4] sm:$0xf]  ;;  %s2025_s25 = sshll.u32 %s2494_s0, 4  ;;  %s2026_s25 = int_to_ptr.vmem [resolvable:$true] %s2025_s25 }
  0x26   :  { %2096 = vmatmul.mubr.msk.bf16.vlgmr.msra.gmra.mrb[0].mxu0 %vm255_vm1, %v2260_v18  ;;  %2105 = vmatmul.mubr.msk.bf16.vlgmr.msra.gmra.mrb[0].mxu1 %vm255_vm1, %v2260_v18  ;;  %v2732_v60 = vrot.slane %v175_v58, %v179_v57  ;;  %v2735_v62 = vrot.slane %v175_v58, %v183_v59  ;;  %v2737_v1 = vrot.slane %v175_v58, %v187_v61  ;;  %s2428_s26 = scalar_lea.vmem %s2026_s25, 256  ;;  %p2433_p1 = scmp.lt.s32.totalorder %s2026_s25, %s2026_s25 }
  0x27   :  { %632 = vmatpush1.bf16.msra.mxu0 %v2550_v19  ;;  %335 = vmatprep.mubr.bf16.mxu0 %v2492_v6  ;;  %p2429_p0 = scmp.ne.s32.totalorder %s2026_s25, %s2428_s26  ;;  %p2434_p2 = scmp.lt.s32.totalorder %s2428_s26, %s2428_s26 }
  0x28   :  { %448 = vmatprep.mubr.bf16.mxu1 %v2492_v6  ;;  %633 = vmatprep.subr.bf16.mxu0 %v2553_v20 }
  0x29   :  { %675 = vmatpush1.bf16.msra.mxu1 %v2557_v21  ;;  %p2435_p3 = por %p2434_p2, %p2433_p1 }
  0x2a   :  { %676 = vmatprep.subr.bf16.mxu1 %v2561_v22 }
  0x2b   :  { %634 = vmatpush1.bf16.msra.mxu0 %v2565_v23  ;;  %p2436_p4 = pnand %p2435_p3, %p2429_p0 }
  0x2c   :  { %635 = vmatprep.subr.bf16.mxu0 %v2568_v24 }
  0x2d   :  { %677 = vmatpush1.bf16.msra.mxu1 %v2574_v26 }
  0x2e   :  { %2097 = vmatmul.mubr.msk.bf16.gmra.mrb[4].mxu0 %vm255_vm1, %v2261_v25  ;;  %2106 = vmatmul.mubr.msk.bf16.gmra.mrb[4].mxu1 %vm255_vm1, %v2261_v25  ;;  %v2744_v25 = vrot.slane %v175_v58, %v191_v2 }
  0x2f   :  { %345 = vmatprep.mubr.bf16.mxu0 %v2492_v6  ;;  %458 = vmatprep.mubr.bf16.mxu1 %v2492_v6 }
  0x30   :  { %636 = vmatpush1.bf16.msra.mxu0 %v2579_v27  ;;  %678 = vmatprep.subr.bf16.mxu1 %v2581_v28 }
  0x31   :  { %637 = vmatprep.subr.bf16.mxu0 %v2585_v29  ;;  %679 = vmatpush1.bf16.msra.mxu1 %v2587_v30 }
  0x32   :  { %680 = vmatprep.subr.bf16.mxu1 %v2591_v31 }
  0x34   :  { %638 = vmatpush1.bf16.msra.mxu0 %v2597_v32 }
  0x35   :  { %639 = vmatprep.subr.bf16.mxu0 %v2603_v34  ;;  %681 = vmatpush1.bf16.msra.mxu1 %v2605_v35 }
  0x36   :  { %2098 = vmatmul.mubr.msk.bf16.gmra.mrb[8].mxu0 %vm255_vm1, %v2262_v33  ;;  %2107 = vmatmul.mubr.msk.bf16.gmra.mrb[8].mxu1 %vm255_vm1, %v2262_v33 }
  0x37   :  { %355 = vmatprep.mubr.bf16.mxu0 %v2492_v6  ;;  %468 = vmatprep.mubr.bf16.mxu1 %v2492_v6 }
  0x38   :  { %640 = vmatpush1.bf16.msra.mxu0 %v2610_v36  ;;  %682 = vmatprep.subr.bf16.mxu1 %v2612_v37 }
  0x39   :  { %641 = vmatprep.subr.bf16.mxu0 %v2616_v38  ;;  %683 = vmatpush1.bf16.msra.mxu1 %v2618_v39 }
  0x3a   :  { %684 = vmatprep.subr.bf16.mxu1 %v2622_v40 }
  0x3c   :  { %642 = vmatpush1.bf16.msra.mxu0 %v2628_v41 }
  0x3d   :  { %643 = vmatprep.subr.bf16.mxu0 %v2634_v43  ;;  %685 = vmatpush1.bf16.msra.mxu1 %v2636_v44 }
  0x3e   :  { %2099 = vmatmul.mubr.msk.bf16.gmra.mrb[12].mxu0 %vm255_vm1, %v2263_v42  ;;  %2108 = vmatmul.mubr.msk.bf16.gmra.mrb[12].mxu1 %vm255_vm1, %v2263_v42 }
  0x3f   :  { %365 = vmatprep.mubr.bf16.mxu0 %v2492_v6  ;;  %478 = vmatprep.mubr.bf16.mxu1 %v2492_v6 }
  0x40   :  { %644 = vmatpush1.bf16.msra.mxu0 %v2641_v45  ;;  %686 = vmatprep.subr.bf16.mxu1 %v2643_v46 }
  0x41   :  { %645 = vmatprep.subr.bf16.mxu0 %v2647_v47  ;;  %687 = vmatpush1.bf16.msra.mxu1 %v2649_v48 }
  0x42   :  { %688 = vmatprep.subr.bf16.mxu1 %v2653_v49 }
  0x44   :  { %646 = vmatpush1.bf16.msra.mxu0 %v2659_v50 }
  0x45   :  { %689 = vmatpush1.bf16.msra.mxu1 %v2665_v52  ;;  %807 = vmatprep.subr.bf16.mxu0 %v2542_v16 }
  0x46   :  { %2100 = vmatmul.mubr.msk.bf16.gmra.mrb[16].mxu0 %vm255_vm1, %v2264_v51  ;;  %2109 = vmatmul.mubr.msk.bf16.gmra.mrb[16].mxu1 %vm255_vm1, %v2264_v51 }
  0x47   :  { %375 = vmatprep.mubr.bf16.mxu0 %v2492_v6  ;;  %488 = vmatprep.mubr.bf16.mxu1 %v2492_v6 }
  0x48   :  { %850 = vmatprep.subr.bf16.mxu1 %v2544_v17 }
  0x4e   :  { %2101 = vmatmul.mubr.msk.bf16.gmra.mrb[20].mxu0 %vm255_vm1, %v2265_v53  ;;  %2110 = vmatmul.mubr.msk.bf16.gmra.mrb[20].mxu1 %vm255_vm1, %v2265_v53 }
  0x4f   :  { %385 = vmatprep.mubr.bf16.mxu0 %v2492_v6  ;;  %498 = vmatprep.mubr.bf16.mxu1 %v2492_v6 }
  0x56   :  { %2102 = vmatmul.mubr.msk.bf16.gmra.mrb[24].mxu0 %vm255_vm1, %v2266_v54  ;;  %2111 = vmatmul.mubr.msk.bf16.gmra.mrb[24].mxu1 %vm255_vm1, %v2266_v54 }
  0x57   :  { %395 = vmatprep.mubr.bf16.mxu0 %v2492_v6  ;;  %508 = vmatprep.mubr.bf16.mxu1 %v2492_v6 }
  0x5e   :  { %2103 = vmatmul.mubr.msk.bf16.gmra.mrb[28].mxu0 %vm255_vm1, %v2267_v55  ;;  %2112 = vmatmul.mubr.msk.bf16.gmra.mrb[28].mxu1 %vm255_vm1, %v2267_v55 }
  0x5f   :  { %663 = vmatprep.mubr.bf16.mxu0 %v2492_v6  ;;  %706 = vmatprep.mubr.bf16.mxu1 %v2492_v6 }
  0x66   :  { %664 = vmatmul.mubr.bf16.vlgmr.msra.gmra.mrb[0].mxu0 %v2493_v56  ;;  %707 = vmatmul.mubr.bf16.vlgmr.msra.gmra.mrb[0].mxu1 %v2493_v56 }
  0x67   :  { %808 = vmatpush1.bf16.msra.mxu0 %v2550_v19  ;;  %851 = vmatpush1.bf16.msra.mxu1 %v2557_v21 }
  0x68   :  { %809 = vmatprep.subr.bf16.mxu0 %v2553_v20  ;;  %852 = vmatprep.subr.bf16.mxu1 %v2561_v22 }
  0x69   :  { %839 = vmatprep.mubr.bf16.mxu0 %v2492_v6  ;;  %882 = vmatprep.mubr.bf16.mxu1 %v2492_v6 }
  0x6b   :  { %810 = vmatpush1.bf16.msra.mxu0 %v2565_v23  ;;  %853 = vmatpush1.bf16.msra.mxu1 %v2574_v26 }
  0x6c   :  { %811 = vmatprep.subr.bf16.mxu0 %v2568_v24  ;;  %854 = vmatprep.subr.bf16.mxu1 %v2581_v28 }
  0x6f   :  { %812 = vmatpush1.bf16.msra.mxu0 %v2579_v27  ;;  %855 = vmatpush1.bf16.msra.mxu1 %v2587_v30 }
  0x70   :  { %813 = vmatprep.subr.bf16.mxu0 %v2585_v29  ;;  %856 = vmatprep.subr.bf16.mxu1 %v2591_v31 }
  0x73   :  { %814 = vmatpush1.bf16.msra.mxu0 %v2597_v32  ;;  %857 = vmatpush1.bf16.msra.mxu1 %v2605_v35 }
  0x74   :  { %815 = vmatprep.subr.bf16.mxu0 %v2603_v34  ;;  %858 = vmatprep.subr.bf16.mxu1 %v2612_v37 }
  0x77   :  { %816 = vmatpush1.bf16.msra.mxu0 %v2610_v36  ;;  %859 = vmatpush1.bf16.msra.mxu1 %v2618_v39 }
  0x78   :  { %817 = vmatprep.subr.bf16.mxu0 %v2616_v38  ;;  %860 = vmatprep.subr.bf16.mxu1 %v2622_v40 }
  0x7b   :  { %818 = vmatpush1.bf16.msra.mxu0 %v2628_v41  ;;  %861 = vmatpush1.bf16.msra.mxu1 %v2636_v44 }
  0x7c   :  { %819 = vmatprep.subr.bf16.mxu0 %v2634_v43  ;;  %862 = vmatprep.subr.bf16.mxu1 %v2643_v46 }
  0x7f   :  { %820 = vmatpush1.bf16.msra.mxu0 %v2641_v45  ;;  %863 = vmatpush1.bf16.msra.mxu1 %v2649_v48 }
  0x80   :  { %821 = vmatprep.subr.bf16.mxu0 %v2647_v47  ;;  %864 = vmatprep.subr.bf16.mxu1 %v2653_v49 }
  0x83   :  { %822 = vmatpush1.bf16.msra.mxu0 %v2659_v50  ;;  %865 = vmatpush1.bf16.msra.mxu1 %v2665_v52 }
  0x84   :  { %984 = vmatprep.subr.bf16.mxu0 %v2542_v16  ;;  %1027 = vmatprep.subr.bf16.mxu1 %v2544_v17 }
 0x139   :  { %v665_v63 = vpop.f32.mrb[0].mxu0  ;;  %v708_v0 = vpop.f32.mrb[0].mxu1 }
 0x13a   :  { %v2116_v3 = vadd.f32 %v665_v63, %v2732_v60  ;;  %v667_v4 = vpop.f32.mrb[1].mxu0  ;;  %v710_v7 = vpop.f32.mrb[1].mxu1  ;;  %v2148_v5 = vadd.f32 %v708_v0, %v2737_v1 }
 0x13b   :  { %v2117_v8 = vadd.f32 %v667_v4, %v2735_v62  ;;  %v669_v9 = vpop.f32.mrb[2].mxu0  ;;  %v712_v10 = vpop.f32.mrb[2].mxu1  ;;  %v2149_v51 = vadd.f32 %v710_v7, %v2744_v25 }
 0x13c   :  { %v725_v11 = vmul.f32 0.5, %v2116_v3  ;;  %v2118_v12 = vadd.f32 %v669_v9, %v2732_v60  ;;  %v671_v13 = vpop.f32.mrb[3].mxu0  ;;  %v714_v14 = vpop.f32.mrb[3].mxu1  ;;  %v2150_v53 = vadd.f32 %v712_v10, %v2737_v1 }
 0x13d   :  { %v733_v15 = vmul.f32 0.5, %v2117_v8  ;;  %v2119_v18 = vadd.f32 %v671_v13, %v2735_v62  ;;  %v743_v54 = vmul.f32 0.5, %v2149_v51  ;;  %v2151_v55 = vadd.f32 %v714_v14, %v2744_v25 }
 0x13e   :  { %2268 = vtanh.f32 %v725_v11  ;;  %v726_v33 = vmul.f32 0.5, %v2118_v12 }
 0x13f   :  { %2270 = vtanh.f32 %v733_v15  ;;  %v734_v42 = vmul.f32 0.5, %v2119_v18  ;;  %v744_v61 = vmul.f32 0.5, %v2151_v55 }
 0x140   :  { %2272 = vtanh.f32 %v726_v33 }
 0x141   :  { %2274 = vtanh.f32 %v2148_v5 }
 0x142   :  { %2276 = vtanh.f32 %v734_v42 }
 0x143   :  { %2278 = vtanh.f32 %v2150_v53 }
 0x144   :  { %2280 = vtanh.f32 %v743_v54 }
 0x145   :  { %2282 = vtanh.f32 %v744_v61 }
 0x148   :  { %v2269_v56 = vpop.eup %2268 }
 0x149   :  { %v2271_v57 = vpop.eup %2270  ;;  %v729_v58 = vadd.f32 1.0, %v2269_v56 }
 0x14a   :  { %v737_v59 = vadd.f32 1.0, %v2271_v57  ;;  %v2273_v63 = vpop.eup %2272 }
 0x14b   :  { %v731_v0 = vmul.f32 0.5, %v729_v58  ;;  %v2275_v2 = vpop.eup %2274  ;;  %v730_v4 = vadd.f32 1.0, %v2273_v63 }
 0x14c   :  { %v739_v3 = vmul.f32 0.5, %v737_v59  ;;  %v2277_v8 = vpop.eup %2276 }
 0x14d   :  { %v751_v7 = vmul.f32 0.0, %v731_v0  ;;  %v732_v10 = vmul.f32 0.5, %v730_v4  ;;  %v738_v11 = vadd.f32 1.0, %v2277_v8  ;;  %v2279_v15 = vpop.eup %2278 }
 0x14e   :  { %v753_v9 = vmul.f32 %v2275_v2, %v739_v3  ;;  %v2281_v5 = vpop.eup %2280 }
 0x14f   :  { %v752_v13 = vmul.f32 0.0, %v732_v10  ;;  %v740_v14 = vmul.f32 0.5, %v738_v11  ;;  %v747_v42 = vadd.f32 1.0, %v2281_v5  ;;  %v2283_v51 = vpop.eup %2282 }
 0x150   :  { %v2750_v12 = vadd.f32 %v753_v9, %v751_v7  ;;  %v748_v54 = vadd.f32 1.0, %v2283_v51 }
 0x151   :  { %v754_v18 = vmul.f32 %v2279_v15, %v740_v14  ;;  %v749_v53 = vmul.f32 0.5, %v747_v42 }
 0x152   :  { %2284 = vtanh.f32 %v2750_v12  ;;  %v750_v57 = vmul.f32 0.5, %v748_v54 }
 0x153   :  { %v2753_v33 = vadd.f32 %v754_v18, %v752_v13 }
 0x155   :  { %2286 = vtanh.f32 %v2753_v33 }
 0x15c   :  { %v2285_v55 = vpop.eup %2284 }
 0x15d   :  { %v759_v56 = vmul.f32 %v2285_v55, %v749_v53 }
 0x15f   :  { %761 = vst [vmem:[#allocation9] sm:$0xff] %v759_v56  ;;  %v2287_v58 = vpop.eup %2286 }
 0x160   :  { %v760_v59 = vmul.f32 %v2287_v58, %v750_v57 }
 0x162   :  { %762 = vst [vmem:[#allocation9 + $0x8] sm:$0xff] %v760_v59  ;;  %v774_v61 = vpack.c.bf16 %v760_v59, %v759_v56 }
 0x164   :  { %840 = vmatmul.mubr.bf16.vlgmr.msra.gmra.mrb[4].mxu0 %v774_v61  ;;  %883 = vmatmul.mubr.bf16.vlgmr.msra.gmra.mrb[4].mxu1 %v774_v61 }
 0x165   :  { %985 = vmatpush1.bf16.msra.mxu0 %v2550_v19  ;;  %1028 = vmatpush1.bf16.msra.mxu1 %v2557_v21 }
 0x166   :  { %986 = vmatprep.subr.bf16.mxu0 %v2553_v20  ;;  %1029 = vmatprep.subr.bf16.mxu1 %v2561_v22 }
 0x167   :  { %1016 = vmatprep.mubr.bf16.mxu0 %v2492_v6  ;;  %1059 = vmatprep.mubr.bf16.mxu1 %v2492_v6 }
 0x169   :  { %987 = vmatpush1.bf16.msra.mxu0 %v2565_v23  ;;  %1030 = vmatpush1.bf16.msra.mxu1 %v2574_v26 }
 0x16a   :  { %988 = vmatprep.subr.bf16.mxu0 %v2568_v24  ;;  %1031 = vmatprep.subr.bf16.mxu1 %v2581_v28 }
 0x16d   :  { %989 = vmatpush1.bf16.msra.mxu0 %v2579_v27  ;;  %1032 = vmatpush1.bf16.msra.mxu1 %v2587_v30 }
 0x16e   :  { %990 = vmatprep.subr.bf16.mxu0 %v2585_v29  ;;  %1033 = vmatprep.subr.bf16.mxu1 %v2591_v31 }
 0x171   :  { %991 = vmatpush1.bf16.msra.mxu0 %v2597_v32  ;;  %1034 = vmatpush1.bf16.msra.mxu1 %v2605_v35 }
 0x172   :  { %992 = vmatprep.subr.bf16.mxu0 %v2603_v34  ;;  %1035 = vmatprep.subr.bf16.mxu1 %v2612_v37 }
 0x175   :  { %993 = vmatpush1.bf16.msra.mxu0 %v2610_v36  ;;  %1036 = vmatpush1.bf16.msra.mxu1 %v2618_v39 }
 0x176   :  { %994 = vmatprep.subr.bf16.mxu0 %v2616_v38  ;;  %1037 = vmatprep.subr.bf16.mxu1 %v2622_v40 }
 0x179   :  { %995 = vmatpush1.bf16.msra.mxu0 %v2628_v41  ;;  %1038 = vmatpush1.bf16.msra.mxu1 %v2636_v44 }
 0x17a   :  { %996 = vmatprep.subr.bf16.mxu0 %v2634_v43  ;;  %1039 = vmatprep.subr.bf16.mxu1 %v2643_v46 }
 0x17d   :  { %997 = vmatpush1.bf16.msra.mxu0 %v2641_v45  ;;  %1040 = vmatpush1.bf16.msra.mxu1 %v2649_v48 }
 0x17e   :  { %998 = vmatprep.subr.bf16.mxu0 %v2647_v47  ;;  %1041 = vmatprep.subr.bf16.mxu1 %v2653_v49 }
 0x181   :  { %999 = vmatpush1.bf16.msra.mxu0 %v2659_v50  ;;  %1042 = vmatpush1.bf16.msra.mxu1 %v2665_v52 }
 0x182   :  { %1161 = vmatprep.subr.bf16.mxu0 %v2542_v16  ;;  %1204 = vmatprep.subr.bf16.mxu1 %v2544_v17 }
 0x237   :  { %v841_v63 = vpop.f32.mrb[4].mxu0  ;;  %v884_v0 = vpop.f32.mrb[4].mxu1 }
 0x238   :  { %v2120_v2 = vadd.f32 %v841_v63, %v2732_v60  ;;  %v843_v3 = vpop.f32.mrb[5].mxu0  ;;  %v886_v4 = vpop.f32.mrb[5].mxu1  ;;  %v2152_v17 = vadd.f32 %v884_v0, %v2737_v1 }
 0x239   :  { %v2121_v8 = vadd.f32 %v843_v3, %v2735_v62  ;;  %v845_v7 = vpop.f32.mrb[6].mxu0  ;;  %v888_v9 = vpop.f32.mrb[6].mxu1  ;;  %v2153_v42 = vadd.f32 %v886_v4, %v2744_v25 }
 0x23a   :  { %v901_v10 = vmul.f32 0.5, %v2120_v2  ;;  %v2122_v11 = vadd.f32 %v845_v7, %v2732_v60  ;;  %v847_v13 = vpop.f32.mrb[7].mxu0  ;;  %v890_v14 = vpop.f32.mrb[7].mxu1  ;;  %v2154_v51 = vadd.f32 %v888_v9, %v2737_v1 }
 0x23b   :  { %v909_v15 = vmul.f32 0.5, %v2121_v8  ;;  %v2123_v16 = vadd.f32 %v847_v13, %v2735_v62  ;;  %v919_v53 = vmul.f32 0.5, %v2153_v42  ;;  %v2155_v54 = vadd.f32 %v890_v14, %v2744_v25 }
 0x23c   :  { %2288 = vtanh.f32 %v901_v10  ;;  %v902_v18 = vmul.f32 0.5, %v2122_v11 }
 0x23d   :  { %2290 = vtanh.f32 %v909_v15  ;;  %v910_v5 = vmul.f32 0.5, %v2123_v16  ;;  %v920_v59 = vmul.f32 0.5, %v2155_v54 }
 0x23e   :  { %2292 = vtanh.f32 %v902_v18 }
 0x23f   :  { %2294 = vtanh.f32 %v2152_v17 }
 0x240   :  { %2296 = vtanh.f32 %v910_v5 }
 0x241   :  { %2298 = vtanh.f32 %v2154_v51 }
 0x242   :  { %2300 = vtanh.f32 %v919_v53 }
 0x243   :  { %2302 = vtanh.f32 %v920_v59 }
 0x246   :  { %v2289_v55 = vpop.eup %2288 }
 0x247   :  { %v2291_v56 = vpop.eup %2290  ;;  %v905_v57 = vadd.f32 1.0, %v2289_v55 }
 0x248   :  { %v913_v58 = vadd.f32 1.0, %v2291_v56  ;;  %v2293_v61 = vpop.eup %2292 }
 0x249   :  { %v907_v63 = vmul.f32 0.5, %v905_v57  ;;  %v2295_v0 = vpop.eup %2294  ;;  %v906_v3 = vadd.f32 1.0, %v2293_v61 }
 0x24a   :  { %v915_v2 = vmul.f32 0.5, %v913_v58  ;;  %v2297_v8 = vpop.eup %2296 }
 0x24b   :  { %v927_v4 = vmul.f32 %v907_v63, %v2750_v12  ;;  %v908_v9 = vmul.f32 0.5, %v906_v3  ;;  %v914_v10 = vadd.f32 1.0, %v2297_v8  ;;  %v2299_v15 = vpop.eup %2298 }
 0x24c   :  { %v929_v7 = vmul.f32 %v2295_v0, %v915_v2  ;;  %v2301_v17 = vpop.eup %2300 }
 0x24d   :  { %v928_v13 = vmul.f32 %v908_v9, %v2753_v33  ;;  %v916_v14 = vmul.f32 0.5, %v914_v10  ;;  %v923_v5 = vadd.f32 1.0, %v2301_v17  ;;  %v2303_v12 = vpop.eup %2302 }
 0x24e   :  { %v2799_v11 = vadd.f32 %v929_v7, %v927_v4  ;;  %v924_v51 = vadd.f32 1.0, %v2303_v12 }
 0x24f   :  { %v930_v16 = vmul.f32 %v2299_v15, %v916_v14  ;;  %v925_v42 = vmul.f32 0.5, %v923_v5 }
 0x250   :  { %2304 = vtanh.f32 %v2799_v11  ;;  %v926_v55 = vmul.f32 0.5, %v924_v51 }
 0x251   :  { %v2803_v18 = vadd.f32 %v930_v16, %v928_v13 }
 0x253   :  { %2306 = vtanh.f32 %v2803_v18 }
 0x25a   :  { %v2305_v53 = vpop.eup %2304 }
 0x25b   :  { %v935_v54 = vmul.f32 %v2305_v53, %v925_v42 }
 0x25d   :  { %938 = vst [vmem:[#allocation9 + $0x10] sm:$0xff] %v935_v54  ;;  %v2307_v56 = vpop.eup %2306 }
 0x25e   :  { %v936_v33 = vmul.f32 %v2307_v56, %v926_v55 }
 0x260   :  { %939 = vst [vmem:[#allocation9 + $0x18] sm:$0xff] %v936_v33  ;;  %v951_v57 = vpack.c.bf16 %v936_v33, %v935_v54 }
 0x262   :  { %1017 = vmatmul.mubr.bf16.vlgmr.msra.gmra.mrb[8].mxu0 %v951_v57  ;;  %1060 = vmatmul.mubr.bf16.vlgmr.msra.gmra.mrb[8].mxu1 %v951_v57 }
 0x263   :  { %1162 = vmatpush1.bf16.msra.mxu0 %v2550_v19  ;;  %1205 = vmatpush1.bf16.msra.mxu1 %v2557_v21 }
 0x264   :  { %1163 = vmatprep.subr.bf16.mxu0 %v2553_v20  ;;  %1206 = vmatprep.subr.bf16.mxu1 %v2561_v22 }
 0x265   :  { %1193 = vmatprep.mubr.bf16.mxu0 %v2492_v6  ;;  %1236 = vmatprep.mubr.bf16.mxu1 %v2492_v6 }
 0x267   :  { %1164 = vmatpush1.bf16.msra.mxu0 %v2565_v23  ;;  %1207 = vmatpush1.bf16.msra.mxu1 %v2574_v26 }
 0x268   :  { %1165 = vmatprep.subr.bf16.mxu0 %v2568_v24  ;;  %1208 = vmatprep.subr.bf16.mxu1 %v2581_v28 }
 0x26b   :  { %1166 = vmatpush1.bf16.msra.mxu0 %v2579_v27  ;;  %1209 = vmatpush1.bf16.msra.mxu1 %v2587_v30 }
 0x26c   :  { %1167 = vmatprep.subr.bf16.mxu0 %v2585_v29  ;;  %1210 = vmatprep.subr.bf16.mxu1 %v2591_v31 }
 0x26f   :  { %1168 = vmatpush1.bf16.msra.mxu0 %v2597_v32  ;;  %1211 = vmatpush1.bf16.msra.mxu1 %v2605_v35 }
 0x270   :  { %1169 = vmatprep.subr.bf16.mxu0 %v2603_v34  ;;  %1212 = vmatprep.subr.bf16.mxu1 %v2612_v37 }
 0x273   :  { %1170 = vmatpush1.bf16.msra.mxu0 %v2610_v36  ;;  %1213 = vmatpush1.bf16.msra.mxu1 %v2618_v39 }
 0x274   :  { %1171 = vmatprep.subr.bf16.mxu0 %v2616_v38  ;;  %1214 = vmatprep.subr.bf16.mxu1 %v2622_v40 }
 0x277   :  { %1172 = vmatpush1.bf16.msra.mxu0 %v2628_v41  ;;  %1215 = vmatpush1.bf16.msra.mxu1 %v2636_v44 }
 0x278   :  { %1173 = vmatprep.subr.bf16.mxu0 %v2634_v43  ;;  %1216 = vmatprep.subr.bf16.mxu1 %v2643_v46 }
 0x27b   :  { %1174 = vmatpush1.bf16.msra.mxu0 %v2641_v45  ;;  %1217 = vmatpush1.bf16.msra.mxu1 %v2649_v48 }
 0x27c   :  { %1175 = vmatprep.subr.bf16.mxu0 %v2647_v47  ;;  %1218 = vmatprep.subr.bf16.mxu1 %v2653_v49 }
 0x27f   :  { %1176 = vmatpush1.bf16.msra.mxu0 %v2659_v50  ;;  %1219 = vmatpush1.bf16.msra.mxu1 %v2665_v52 }
 0x335   :  { %v1018_v19 = vpop.f32.mrb[8].mxu0  ;;  %v1061_v20 = vpop.f32.mrb[8].mxu1 }
 0x336   :  { %v2124_v21 = vadd.f32 %v1018_v19, %v2732_v60  ;;  %v1020_v22 = vpop.f32.mrb[9].mxu0  ;;  %v1063_v23 = vpop.f32.mrb[9].mxu1  ;;  %v2156_v36 = vadd.f32 %v1061_v20, %v2737_v1 }
 0x337   :  { %v2125_v24 = vadd.f32 %v1020_v22, %v2735_v62  ;;  %v1022_v26 = vpop.f32.mrb[10].mxu0  ;;  %v1065_v27 = vpop.f32.mrb[10].mxu1  ;;  %v2157_v61 = vadd.f32 %v1063_v23, %v2744_v25 }
 0x338   :  { %v1078_v28 = vmul.f32 0.5, %v2124_v21  ;;  %v2126_v29 = vadd.f32 %v1022_v26, %v2732_v60  ;;  %v1024_v30 = vpop.f32.mrb[11].mxu0  ;;  %v1067_v31 = vpop.f32.mrb[11].mxu1  ;;  %v2158_v63 = vadd.f32 %v1065_v27, %v2737_v1 }
 0x339   :  { %v1086_v32 = vmul.f32 0.5, %v2125_v24  ;;  %v2127_v34 = vadd.f32 %v1024_v30, %v2735_v62  ;;  %v1096_v0 = vmul.f32 0.5, %v2157_v61  ;;  %v2159_v2 = vadd.f32 %v1067_v31, %v2744_v25  ;;  %v2858_v30 = vld [vmem:[#allocation3 + $0x18] sm:$0xff]  ;;  %v2862_v31 = vld [vmem:[#allocation3] sm:$0xff]  ;;  %v2880_v61 = vld [vmem:[#allocation3 + $0x48] sm:$0xff] }
 0x33a   :  { %2308 = vtanh.f32 %v1078_v28  ;;  %v1079_v58 = vmul.f32 0.5, %v2126_v29  ;;  %v2856_v29 = vld [vmem:[#allocation3 + $0x8] sm:$0xff]  ;;  %1381 = vmatprep.subr.bf16.mxu1 %v2858_v30 }
 0x33b   :  { %2310 = vtanh.f32 %v1086_v32  ;;  %v1087_v59 = vmul.f32 0.5, %v2127_v34  ;;  %v1097_v9 = vmul.f32 0.5, %v2159_v2  ;;  %1338 = vmatprep.subr.bf16.mxu0 %v2856_v29  ;;  %v2864_v32 = vld [vmem:[#allocation3 + $0x10] sm:$0xff]  ;;  %v2868_v34 = vld [vmem:[#allocation3 + $0x28] sm:$0xff] }
 0x33c   :  { %2312 = vtanh.f32 %v1079_v58  ;;  %v2874_v58 = vld [vmem:[#allocation3 + $0x20] sm:$0xff]  ;;  %v2888_v2 = vld [vmem:[#allocation3 + $0x50] sm:$0xff] }
 0x33d   :  { %2314 = vtanh.f32 %v2156_v36  ;;  %v2870_v36 = vld [vmem:[#allocation3 + $0x38] sm:$0xff] }
 0x33e   :  { %2316 = vtanh.f32 %v1087_v59  ;;  %v2876_v59 = vld [vmem:[#allocation3 + $0x30] sm:$0xff] }
 0x33f   :  { %2318 = vtanh.f32 %v2158_v63  ;;  %v2882_v63 = vld [vmem:[#allocation3 + $0x58] sm:$0xff] }
 0x340   :  { %2320 = vtanh.f32 %v1096_v0  ;;  %v2886_v0 = vld [vmem:[#allocation3 + $0x40] sm:$0xff] }
 0x341   :  { %2322 = vtanh.f32 %v1097_v9  ;;  %v2906_v9 = vld [vmem:[#allocation3 + $0x80] sm:$0xff] }
 0x344   :  { %v2309_v3 = vpop.eup %2308 }
 0x345   :  { %v2311_v8 = vpop.eup %2310  ;;  %v1082_v4 = vadd.f32 1.0, %v2309_v3  ;;  %v2892_v3 = vld [vmem:[#allocation3 + $0x68] sm:$0xff] }
 0x346   :  { %v1090_v7 = vadd.f32 1.0, %v2311_v8  ;;  %v2313_v10 = vpop.eup %2312  ;;  %v2894_v8 = vld [vmem:[#allocation3 + $0x78] sm:$0xff] }
 0x347   :  { %v1084_v13 = vmul.f32 0.5, %v1082_v4  ;;  %v2315_v14 = vpop.eup %2314  ;;  %v1083_v16 = vadd.f32 1.0, %v2313_v10  ;;  %v2898_v4 = vld [vmem:[#allocation3 + $0x60] sm:$0xff] }
 0x348   :  { %v1092_v15 = vmul.f32 0.5, %v1090_v7  ;;  %v2317_v17 = vpop.eup %2316  ;;  %v2903_v7 = vld [vmem:[#allocation3 + $0x88] sm:$0xff] }
 0x349   :  { %v1104_v5 = vmul.f32 %v1084_v13, %v2799_v11  ;;  %v1085_v42 = vmul.f32 0.5, %v1083_v16  ;;  %v1091_v51 = vadd.f32 1.0, %v2317_v17  ;;  %v2319_v56 = vpop.eup %2318 }
 0x34a   :  { %v1106_v12 = vmul.f32 %v2315_v14, %v1092_v15  ;;  %v2321_v57 = vpop.eup %2320 }
 0x34b   :  { %v1105_v54 = vmul.f32 %v1085_v42, %v2803_v18  ;;  %v1093_v55 = vmul.f32 0.5, %v1091_v51  ;;  %v1100_v20 = vadd.f32 1.0, %v2321_v57  ;;  %v2323_v11 = vpop.eup %2322 }
 0x34c   :  { %v2847_v53 = vadd.f32 %v1106_v12, %v1104_v5  ;;  %v1101_v22 = vadd.f32 1.0, %v2323_v11 }
 0x34d   :  { %v1107_v33 = vmul.f32 %v2319_v56, %v1093_v55  ;;  %v1102_v21 = vmul.f32 0.5, %v1100_v20 }
 0x34e   :  { %2324 = vtanh.f32 %v2847_v53  ;;  %v1103_v26 = vmul.f32 0.5, %v1101_v22 }
 0x34f   :  { %v2851_v19 = vadd.f32 %v1107_v33, %v1105_v54 }
 0x351   :  { %2326 = vtanh.f32 %v2851_v19 }
 0x358   :  { %v2325_v23 = vpop.eup %2324 }
 0x359   :  { %v1112_v24 = vmul.f32 %v2325_v23, %v1102_v21 }
 0x35b   :  { %1115 = vst [vmem:[#allocation9 + $0x20] sm:$0xff] %v1112_v24  ;;  %v2327_v27 = vpop.eup %2326 }
 0x35c   :  { %v1113_v18 = vmul.f32 %v2327_v27, %v1103_v26 }
 0x35e   :  { %1116 = vst [vmem:[#allocation9 + $0x28] sm:$0xff] %v1113_v18  ;;  %v1128_v28 = vpack.c.bf16 %v1113_v18, %v1112_v24 }
 0x360   :  { %1194 = vmatmul.mubr.bf16.vlgmr.msra.gmra.mrb[12].mxu0 %v1128_v28  ;;  %1237 = vmatmul.mubr.bf16.vlgmr.msra.gmra.mrb[12].mxu1 %v1128_v28 }
 0x361   :  { %1370 = vmatprep.mubr.bf16.mxu0 %v2492_v6  ;;  %1413 = vmatprep.mubr.bf16.mxu1 %v2492_v6 }
 0x362   :  { %1339 = vmatpush1.bf16.msra.mxu0 %v2862_v31  ;;  %1382 = vmatpush1.bf16.msra.mxu1 %v2864_v32 }
 0x363   :  { %1340 = vmatprep.subr.bf16.mxu0 %v2868_v34  ;;  %1383 = vmatprep.subr.bf16.mxu1 %v2870_v36 }
 0x366   :  { %1341 = vmatpush1.bf16.msra.mxu0 %v2874_v58  ;;  %1384 = vmatpush1.bf16.msra.mxu1 %v2876_v59 }
 0x367   :  { %1342 = vmatprep.subr.bf16.mxu0 %v2880_v61  ;;  %1385 = vmatprep.subr.bf16.mxu1 %v2882_v63 }
 0x36a   :  { %1343 = vmatpush1.bf16.msra.mxu0 %v2886_v0  ;;  %1386 = vmatpush1.bf16.msra.mxu1 %v2888_v2 }
 0x36b   :  { %1344 = vmatprep.subr.bf16.mxu0 %v2892_v3  ;;  %1387 = vmatprep.subr.bf16.mxu1 %v2894_v8 }
 0x36e   :  { %1345 = vmatpush1.bf16.msra.mxu0 %v2898_v4  ;;  %1388 = vmatpush1.bf16.msra.mxu1 %v2605_v35 }
 0x36f   :  { %1389 = vmatprep.subr.bf16.mxu1 %v2612_v37  ;;  %1346 = vmatprep.subr.bf16.mxu0 %v2903_v7 }
 0x372   :  { %1347 = vmatpush1.bf16.msra.mxu0 %v2906_v9  ;;  %1390 = vmatpush1.bf16.msra.mxu1 %v2618_v39 }
 0x373   :  { %1348 = vmatprep.subr.bf16.mxu0 %v2616_v38  ;;  %1391 = vmatprep.subr.bf16.mxu1 %v2622_v40 }
 0x376   :  { %1349 = vmatpush1.bf16.msra.mxu0 %v2628_v41  ;;  %1392 = vmatpush1.bf16.msra.mxu1 %v2636_v44 }
 0x377   :  { %1350 = vmatprep.subr.bf16.mxu0 %v2634_v43  ;;  %1393 = vmatprep.subr.bf16.mxu1 %v2643_v46 }
 0x37a   :  { %1351 = vmatpush1.bf16.msra.mxu0 %v2641_v45  ;;  %1394 = vmatpush1.bf16.msra.mxu1 %v2649_v48 }
 0x37b   :  { %1352 = vmatprep.subr.bf16.mxu0 %v2647_v47  ;;  %1395 = vmatprep.subr.bf16.mxu1 %v2653_v49 }
 0x37e   :  { %1353 = vmatpush1.bf16.msra.mxu0 %v2659_v50  ;;  %1396 = vmatpush1.bf16.msra.mxu1 %v2665_v52 }
 0x37f   :  { %1515 = vmatprep.subr.bf16.mxu0 %v2856_v29  ;;  %1558 = vmatprep.subr.bf16.mxu1 %v2858_v30 }
 0x433   :  { %v1195_v35 = vpop.f32.mrb[12].mxu0  ;;  %v1238_v37 = vpop.f32.mrb[12].mxu1 }
 0x434   :  { %v2128_v38 = vadd.f32 %v1195_v35, %v2732_v60  ;;  %v1197_v39 = vpop.f32.mrb[13].mxu0  ;;  %v1240_v40 = vpop.f32.mrb[13].mxu1  ;;  %v2160_v52 = vadd.f32 %v1238_v37, %v2737_v1 }
 0x435   :  { %v2129_v41 = vadd.f32 %v1197_v39, %v2735_v62  ;;  %v1199_v43 = vpop.f32.mrb[14].mxu0  ;;  %v1242_v44 = vpop.f32.mrb[14].mxu1  ;;  %v2161_v14 = vadd.f32 %v1240_v40, %v2744_v25 }
 0x436   :  { %v1255_v45 = vmul.f32 0.5, %v2128_v38  ;;  %v2130_v46 = vadd.f32 %v1199_v43, %v2732_v60  ;;  %v1201_v47 = vpop.f32.mrb[15].mxu0  ;;  %v1244_v48 = vpop.f32.mrb[15].mxu1  ;;  %v2162_v15 = vadd.f32 %v1242_v44, %v2737_v1 }
 0x437   :  { %v1263_v49 = vmul.f32 0.5, %v2129_v41  ;;  %v2131_v50 = vadd.f32 %v1201_v47, %v2735_v62  ;;  %v1273_v16 = vmul.f32 0.5, %v2161_v14  ;;  %v2163_v17 = vadd.f32 %v1244_v48, %v2744_v25  ;;  %v2957_v48 = vld [vmem:[#allocation3 + $0x70] sm:$0xff] }
 0x438   :  { %2328 = vtanh.f32 %v1255_v45  ;;  %v1256_v10 = vmul.f32 0.5, %v2130_v46  ;;  %v2974_v14 = vld [vmem:[#allocation3 + $0xb0] sm:$0xff] }
 0x439   :  { %2330 = vtanh.f32 %v1263_v49  ;;  %v1264_v13 = vmul.f32 0.5, %v2131_v50  ;;  %v1274_v54 = vmul.f32 0.5, %v2163_v17  ;;  %v2960_v49 = vld [vmem:[#allocation3 + $0x98] sm:$0xff]  ;;  %v2963_v50 = vld [vmem:[#allocation3 + $0x90] sm:$0xff]  ;;  %v2984_v17 = vld [vmem:[#allocation3 + $0xc0] sm:$0xff] }
 0x43a   :  { %2332 = vtanh.f32 %v1256_v10  ;;  %v2968_v10 = vld [vmem:[#allocation3 + $0xb8] sm:$0xff] }
 0x43b   :  { %2334 = vtanh.f32 %v2160_v52  ;;  %v2966_v52 = vld [vmem:[#allocation3 + $0xa8] sm:$0xff] }
 0x43c   :  { %2336 = vtanh.f32 %v1264_v13  ;;  %v2972_v13 = vld [vmem:[#allocation3 + $0xa0] sm:$0xff] }
 0x43d   :  { %2338 = vtanh.f32 %v2162_v15  ;;  %v2978_v15 = vld [vmem:[#allocation3 + $0xc8] sm:$0xff] }
 0x43e   :  { %2340 = vtanh.f32 %v1273_v16  ;;  %v2980_v16 = vld [vmem:[#allocation3 + $0xd8] sm:$0xff] }
 0x43f   :  { %2342 = vtanh.f32 %v1274_v54  ;;  %v2998_v54 = vld [vmem:[#allocation3 + $0xf0] sm:$0xff] }
 0x442   :  { %v2329_v5 = vpop.eup %2328 }
 0x443   :  { %v2331_v12 = vpop.eup %2330  ;;  %v1259_v42 = vadd.f32 1.0, %v2329_v5  ;;  %v2986_v5 = vld [vmem:[#allocation3 + $0xd0] sm:$0xff] }
 0x444   :  { %v1267_v51 = vadd.f32 1.0, %v2331_v12  ;;  %v2333_v55 = vpop.eup %2332  ;;  %v2990_v12 = vld [vmem:[#allocation3 + $0xe8] sm:$0xff] }
 0x445   :  { %v1261_v56 = vmul.f32 0.5, %v1259_v42  ;;  %v2335_v33 = vpop.eup %2334  ;;  %v1260_v20 = vadd.f32 1.0, %v2333_v55  ;;  %v2992_v42 = vld [vmem:[#allocation3 + $0xf8] sm:$0xff] }
 0x446   :  { %v1269_v57 = vmul.f32 0.5, %v1267_v51  ;;  %v2337_v11 = vpop.eup %2336  ;;  %v2996_v51 = vld [vmem:[#allocation3 + $0xe0] sm:$0xff] }
 0x447   :  { %v1281_v21 = vmul.f32 %v1261_v56, %v2847_v53  ;;  %v1262_v23 = vmul.f32 0.5, %v1260_v20  ;;  %v1268_v24 = vadd.f32 1.0, %v2337_v11  ;;  %v2339_v28 = vpop.eup %2338 }
 0x448   :  { %v1283_v22 = vmul.f32 %v2335_v33, %v1269_v57  ;;  %v2341_v37 = vpop.eup %2340 }
 0x449   :  { %v1282_v27 = vmul.f32 %v1262_v23, %v2851_v19  ;;  %v1270_v18 = vmul.f32 0.5, %v1268_v24  ;;  %v1277_v39 = vadd.f32 1.0, %v2341_v37  ;;  %v2343_v53 = vpop.eup %2342 }
 0x44a   :  { %v2933_v26 = vadd.f32 %v1283_v22, %v1281_v21  ;;  %v1278_v41 = vadd.f32 1.0, %v2343_v53 }
 0x44b   :  { %v1284_v35 = vmul.f32 %v2339_v28, %v1270_v18  ;;  %v1279_v40 = vmul.f32 0.5, %v1277_v39 }
 0x44c   :  { %2344 = vtanh.f32 %v2933_v26  ;;  %v1280_v45 = vmul.f32 0.5, %v1278_v41 }
 0x44d   :  { %v2937_v38 = vadd.f32 %v1284_v35, %v1282_v27 }
 0x44f   :  { %2346 = vtanh.f32 %v2937_v38 }
 0x456   :  { %v2345_v43 = vpop.eup %2344 }
 0x457   :  { %v1289_v44 = vmul.f32 %v2345_v43, %v1279_v40 }
 0x459   :  { %1292 = vst [vmem:[#allocation9 + $0x30] sm:$0xff] %v1289_v44  ;;  %v2347_v46 = vpop.eup %2346 }
 0x45a   :  { %v1290_v19 = vmul.f32 %v2347_v46, %v1280_v45 }
 0x45c   :  { %1293 = vst [vmem:[#allocation9 + $0x38] sm:$0xff] %v1290_v19  ;;  %v1305_v47 = vpack.c.bf16 %v1290_v19, %v1289_v44 }
 0x45e   :  { %1371 = vmatmul.mubr.bf16.vlgmr.msra.gmra.mrb[16].mxu0 %v1305_v47  ;;  %1414 = vmatmul.mubr.bf16.vlgmr.msra.gmra.mrb[16].mxu1 %v1305_v47 }
 0x45f   :  { %1516 = vmatpush1.bf16.msra.mxu0 %v2862_v31  ;;  %1559 = vmatpush1.bf16.msra.mxu1 %v2864_v32 }
 0x460   :  { %1517 = vmatprep.subr.bf16.mxu0 %v2868_v34  ;;  %1560 = vmatprep.subr.bf16.mxu1 %v2870_v36 }
 0x461   :  { %1547 = vmatprep.mubr.bf16.mxu0 %v2492_v6  ;;  %1590 = vmatprep.mubr.bf16.mxu1 %v2492_v6 }
 0x463   :  { %1518 = vmatpush1.bf16.msra.mxu0 %v2874_v58  ;;  %1561 = vmatpush1.bf16.msra.mxu1 %v2876_v59 }
 0x464   :  { %1519 = vmatprep.subr.bf16.mxu0 %v2880_v61  ;;  %1562 = vmatprep.subr.bf16.mxu1 %v2882_v63 }
 0x467   :  { %1520 = vmatpush1.bf16.msra.mxu0 %v2886_v0  ;;  %1563 = vmatpush1.bf16.msra.mxu1 %v2888_v2 }
 0x468   :  { %1521 = vmatprep.subr.bf16.mxu0 %v2892_v3  ;;  %1564 = vmatprep.subr.bf16.mxu1 %v2894_v8 }
 0x46b   :  { %1522 = vmatpush1.bf16.msra.mxu0 %v2898_v4  ;;  %1565 = vmatpush1.bf16.msra.mxu1 %v2957_v48 }
 0x46c   :  { %1523 = vmatprep.subr.bf16.mxu0 %v2903_v7  ;;  %1566 = vmatprep.subr.bf16.mxu1 %v2960_v49 }
 0x46f   :  { %1524 = vmatpush1.bf16.msra.mxu0 %v2906_v9  ;;  %1567 = vmatpush1.bf16.msra.mxu1 %v2963_v50 }
 0x470   :  { %1525 = vmatprep.subr.bf16.mxu0 %v2966_v52  ;;  %1568 = vmatprep.subr.bf16.mxu1 %v2968_v10 }
 0x473   :  { %1526 = vmatpush1.bf16.msra.mxu0 %v2972_v13  ;;  %1569 = vmatpush1.bf16.msra.mxu1 %v2974_v14 }
 0x474   :  { %1527 = vmatprep.subr.bf16.mxu0 %v2978_v15  ;;  %1570 = vmatprep.subr.bf16.mxu1 %v2980_v16 }
 0x477   :  { %1528 = vmatpush1.bf16.msra.mxu0 %v2984_v17  ;;  %1571 = vmatpush1.bf16.msra.mxu1 %v2986_v5 }
 0x478   :  { %1529 = vmatprep.subr.bf16.mxu0 %v2990_v12  ;;  %1572 = vmatprep.subr.bf16.mxu1 %v2992_v42 }
 0x47b   :  { %1530 = vmatpush1.bf16.msra.mxu0 %v2996_v51  ;;  %1573 = vmatpush1.bf16.msra.mxu1 %v2998_v54 }
 0x47c   :  { %1692 = vmatprep.subr.bf16.mxu0 %v2856_v29  ;;  %1735 = vmatprep.subr.bf16.mxu1 %v2858_v30 }
 0x531   :  { %v1372_v55 = vpop.f32.mrb[16].mxu0  ;;  %v1415_v56 = vpop.f32.mrb[16].mxu1 }
 0x532   :  { %v2132_v33 = vadd.f32 %v1372_v55, %v2732_v60  ;;  %v1374_v57 = vpop.f32.mrb[17].mxu0  ;;  %v1417_v20 = vpop.f32.mrb[17].mxu1  ;;  %v2164_v37 = vadd.f32 %v1415_v56, %v2737_v1 }
 0x533   :  { %v2133_v11 = vadd.f32 %v1374_v57, %v2735_v62  ;;  %v1376_v21 = vpop.f32.mrb[18].mxu0  ;;  %v1419_v22 = vpop.f32.mrb[18].mxu1  ;;  %v2165_v40 = vadd.f32 %v1417_v20, %v2744_v25 }
 0x534   :  { %v1432_v23 = vmul.f32 0.5, %v2132_v33  ;;  %v2134_v24 = vadd.f32 %v1376_v21, %v2732_v60  ;;  %v1378_v27 = vpop.f32.mrb[19].mxu0  ;;  %v1421_v18 = vpop.f32.mrb[19].mxu1  ;;  %v2166_v41 = vadd.f32 %v1419_v22, %v2737_v1 }
 0x535   :  { %v1440_v28 = vmul.f32 0.5, %v2133_v11  ;;  %v2135_v35 = vadd.f32 %v1378_v27, %v2735_v62  ;;  %v1450_v43 = vmul.f32 0.5, %v2165_v40  ;;  %v2167_v44 = vadd.f32 %v1421_v18, %v2744_v25 }
 0x536   :  { %2348 = vtanh.f32 %v1432_v23  ;;  %v1433_v39 = vmul.f32 0.5, %v2134_v24 }
 0x537   :  { %2350 = vtanh.f32 %v1440_v28  ;;  %v1441_v53 = vmul.f32 0.5, %v2135_v35  ;;  %v1451_v55 = vmul.f32 0.5, %v2167_v44 }
 0x538   :  { %2352 = vtanh.f32 %v1433_v39 }
 0x539   :  { %2354 = vtanh.f32 %v2164_v37 }
 0x53a   :  { %2356 = vtanh.f32 %v1441_v53 }
 0x53b   :  { %2358 = vtanh.f32 %v2166_v41 }
 0x53c   :  { %2360 = vtanh.f32 %v1450_v43 }
 0x53d   :  { %2362 = vtanh.f32 %v1451_v55 }
 0x540   :  { %v2349_v45 = vpop.eup %2348 }
 0x541   :  { %v2351_v46 = vpop.eup %2350  ;;  %v1436_v19 = vadd.f32 1.0, %v2349_v45 }
 0x542   :  { %v1444_v47 = vadd.f32 1.0, %v2351_v46  ;;  %v2353_v56 = vpop.eup %2352 }
 0x543   :  { %v1438_v33 = vmul.f32 0.5, %v1436_v19  ;;  %v2355_v57 = vpop.eup %2354  ;;  %v1437_v21 = vadd.f32 1.0, %v2353_v56 }
 0x544   :  { %v1446_v11 = vmul.f32 0.5, %v1444_v47  ;;  %v2357_v23 = vpop.eup %2356 }
 0x545   :  { %v1458_v20 = vmul.f32 %v1438_v33, %v2933_v26  ;;  %v1439_v24 = vmul.f32 0.5, %v1437_v21  ;;  %v1445_v27 = vadd.f32 1.0, %v2357_v23  ;;  %v2359_v37 = vpop.eup %2358 }
 0x546   :  { %v1460_v22 = vmul.f32 %v2355_v57, %v1446_v11  ;;  %v2361_v53 = vpop.eup %2360 }
 0x547   :  { %v1459_v28 = vmul.f32 %v1439_v24, %v2937_v38  ;;  %v1447_v35 = vmul.f32 0.5, %v1445_v27  ;;  %v1454_v41 = vadd.f32 1.0, %v2361_v53  ;;  %v2363_v26 = vpop.eup %2362 }
 0x548   :  { %v3013_v18 = vadd.f32 %v1460_v22, %v1458_v20  ;;  %v1455_v44 = vadd.f32 1.0, %v2363_v26 }
 0x549   :  { %v1461_v39 = vmul.f32 %v2359_v37, %v1447_v35  ;;  %v1456_v43 = vmul.f32 0.5, %v1454_v41 }
 0x54a   :  { %2364 = vtanh.f32 %v3013_v18  ;;  %v1457_v19 = vmul.f32 0.5, %v1455_v44 }
 0x54b   :  { %v3017_v40 = vadd.f32 %v1461_v39, %v1459_v28 }
 0x54d   :  { %2366 = vtanh.f32 %v3017_v40 }
 0x554   :  { %v2365_v45 = vpop.eup %2364 }
 0x555   :  { %v1466_v46 = vmul.f32 %v2365_v45, %v1456_v43 }
 0x557   :  { %1469 = vst [vmem:[#allocation9 + $0x40] sm:$0xff] %v1466_v46  ;;  %v2367_v47 = vpop.eup %2366 }
 0x558   :  { %v1467_v38 = vmul.f32 %v2367_v47, %v1457_v19 }
 0x55a   :  { %1470 = vst [vmem:[#allocation9 + $0x48] sm:$0xff] %v1467_v38  ;;  %v1482_v55 = vpack.c.bf16 %v1467_v38, %v1466_v46 }
 0x55c   :  { %1548 = vmatmul.mubr.bf16.vlgmr.msra.gmra.mrb[20].mxu0 %v1482_v55  ;;  %1591 = vmatmul.mubr.bf16.vlgmr.msra.gmra.mrb[20].mxu1 %v1482_v55 }
 0x55d   :  { %1693 = vmatpush1.bf16.msra.mxu0 %v2862_v31  ;;  %1736 = vmatpush1.bf16.msra.mxu1 %v2864_v32 }
 0x55e   :  { %1694 = vmatprep.subr.bf16.mxu0 %v2868_v34  ;;  %1737 = vmatprep.subr.bf16.mxu1 %v2870_v36 }
 0x55f   :  { %1724 = vmatprep.mubr.bf16.mxu0 %v2492_v6  ;;  %1767 = vmatprep.mubr.bf16.mxu1 %v2492_v6 }
 0x561   :  { %1695 = vmatpush1.bf16.msra.mxu0 %v2874_v58  ;;  %1738 = vmatpush1.bf16.msra.mxu1 %v2876_v59 }
 0x562   :  { %1696 = vmatprep.subr.bf16.mxu0 %v2880_v61  ;;  %1739 = vmatprep.subr.bf16.mxu1 %v2882_v63 }
 0x565   :  { %1697 = vmatpush1.bf16.msra.mxu0 %v2886_v0  ;;  %1740 = vmatpush1.bf16.msra.mxu1 %v2888_v2 }
 0x566   :  { %1698 = vmatprep.subr.bf16.mxu0 %v2892_v3  ;;  %1741 = vmatprep.subr.bf16.mxu1 %v2894_v8 }
 0x569   :  { %1699 = vmatpush1.bf16.msra.mxu0 %v2898_v4  ;;  %1742 = vmatpush1.bf16.msra.mxu1 %v2957_v48 }
 0x56a   :  { %1700 = vmatprep.subr.bf16.mxu0 %v2903_v7  ;;  %1743 = vmatprep.subr.bf16.mxu1 %v2960_v49 }
 0x56d   :  { %1701 = vmatpush1.bf16.msra.mxu0 %v2906_v9  ;;  %1744 = vmatpush1.bf16.msra.mxu1 %v2963_v50 }
 0x56e   :  { %1702 = vmatprep.subr.bf16.mxu0 %v2966_v52  ;;  %1745 = vmatprep.subr.bf16.mxu1 %v2968_v10 }
 0x571   :  { %1703 = vmatpush1.bf16.msra.mxu0 %v2972_v13  ;;  %1746 = vmatpush1.bf16.msra.mxu1 %v2974_v14 }
 0x572   :  { %1704 = vmatprep.subr.bf16.mxu0 %v2978_v15  ;;  %1747 = vmatprep.subr.bf16.mxu1 %v2980_v16 }
 0x575   :  { %1705 = vmatpush1.bf16.msra.mxu0 %v2984_v17  ;;  %1748 = vmatpush1.bf16.msra.mxu1 %v2986_v5 }
 0x576   :  { %1706 = vmatprep.subr.bf16.mxu0 %v2990_v12  ;;  %1749 = vmatprep.subr.bf16.mxu1 %v2992_v42 }
 0x579   :  { %1707 = vmatpush1.bf16.msra.mxu0 %v2996_v51  ;;  %1750 = vmatpush1.bf16.msra.mxu1 %v2998_v54 }
 0x57a   :  { %1869 = vmatprep.subr.bf16.mxu0 %v2856_v29  ;;  %1912 = vmatprep.subr.bf16.mxu1 %v2858_v30 }
 0x62f   :  { %v1549_v56 = vpop.f32.mrb[20].mxu0  ;;  %v1592_v33 = vpop.f32.mrb[20].mxu1 }
 0x630   :  { %v2136_v57 = vadd.f32 %v1549_v56, %v2732_v60  ;;  %v1551_v11 = vpop.f32.mrb[21].mxu0  ;;  %v1594_v21 = vpop.f32.mrb[21].mxu1  ;;  %v2168_v30 = vadd.f32 %v1592_v33, %v2737_v1 }
 0x631   :  { %v2137_v23 = vadd.f32 %v1551_v11, %v2735_v62  ;;  %v1553_v20 = vpop.f32.mrb[22].mxu0  ;;  %v1596_v22 = vpop.f32.mrb[22].mxu1  ;;  %v2169_v41 = vadd.f32 %v1594_v21, %v2744_v25 }
 0x632   :  { %v1609_v24 = vmul.f32 0.5, %v2136_v57  ;;  %v2138_v27 = vadd.f32 %v1553_v20, %v2732_v60  ;;  %v1555_v28 = vpop.f32.mrb[23].mxu0  ;;  %v1598_v35 = vpop.f32.mrb[23].mxu1  ;;  %v2170_v26 = vadd.f32 %v1596_v22, %v2737_v1 }
 0x633   :  { %v1617_v37 = vmul.f32 0.5, %v2137_v23  ;;  %v2139_v29 = vadd.f32 %v1555_v28, %v2735_v62  ;;  %v1627_v43 = vmul.f32 0.5, %v2169_v41  ;;  %v2171_v44 = vadd.f32 %v1598_v35, %v2744_v25 }
 0x634   :  { %2368 = vtanh.f32 %v1609_v24  ;;  %v1610_v39 = vmul.f32 0.5, %v2138_v27 }
 0x635   :  { %2370 = vtanh.f32 %v1617_v37  ;;  %v1618_v53 = vmul.f32 0.5, %v2139_v29  ;;  %v1628_v38 = vmul.f32 0.5, %v2171_v44 }
 0x636   :  { %2372 = vtanh.f32 %v1610_v39 }
 0x637   :  { %2374 = vtanh.f32 %v2168_v30 }
 0x638   :  { %2376 = vtanh.f32 %v1618_v53 }
 0x639   :  { %2378 = vtanh.f32 %v2170_v26 }
 0x63a   :  { %2380 = vtanh.f32 %v1627_v43 }
 0x63b   :  { %2382 = vtanh.f32 %v1628_v38 }
 0x63e   :  { %v2369_v45 = vpop.eup %2368 }
 0x63f   :  { %v2371_v46 = vpop.eup %2370  ;;  %v1613_v19 = vadd.f32 1.0, %v2369_v45 }
 0x640   :  { %v1621_v47 = vadd.f32 1.0, %v2371_v46  ;;  %v2373_v55 = vpop.eup %2372 }
 0x641   :  { %v1615_v56 = vmul.f32 0.5, %v1613_v19  ;;  %v2375_v33 = vpop.eup %2374  ;;  %v1614_v11 = vadd.f32 1.0, %v2373_v55 }
 0x642   :  { %v1623_v57 = vmul.f32 0.5, %v1621_v47  ;;  %v2377_v23 = vpop.eup %2376 }
 0x643   :  { %v1635_v21 = vmul.f32 %v1615_v56, %v3013_v18  ;;  %v1616_v22 = vmul.f32 0.5, %v1614_v11  ;;  %v1622_v24 = vadd.f32 1.0, %v2377_v23  ;;  %v2379_v37 = vpop.eup %2378 }
 0x644   :  { %v1637_v20 = vmul.f32 %v2375_v33, %v1623_v57  ;;  %v2381_v30 = vpop.eup %2380 }
 0x645   :  { %v1636_v28 = vmul.f32 %v1616_v22, %v3017_v40  ;;  %v1624_v35 = vmul.f32 0.5, %v1622_v24  ;;  %v1631_v53 = vadd.f32 1.0, %v2381_v30  ;;  %v2383_v18 = vpop.eup %2382 }
 0x646   :  { %v3063_v27 = vadd.f32 %v1637_v20, %v1635_v21  ;;  %v1632_v26 = vadd.f32 1.0, %v2383_v18 }
 0x647   :  { %v1638_v29 = vmul.f32 %v2379_v37, %v1624_v35  ;;  %v1633_v41 = vmul.f32 0.5, %v1631_v53 }
 0x648   :  { %2384 = vtanh.f32 %v3063_v27  ;;  %v1634_v45 = vmul.f32 0.5, %v1632_v26 }
 0x649   :  { %v3067_v39 = vadd.f32 %v1638_v29, %v1636_v28 }
 0x64b   :  { %2386 = vtanh.f32 %v3067_v39 }
 0x652   :  { %v2385_v43 = vpop.eup %2384 }
 0x653   :  { %v1643_v44 = vmul.f32 %v2385_v43, %v1633_v41 }
 0x655   :  { %1646 = vst [vmem:[#allocation9 + $0x50] sm:$0xff] %v1643_v44  ;;  %v2387_v46 = vpop.eup %2386 }
 0x656   :  { %v1644_v40 = vmul.f32 %v2387_v46, %v1634_v45 }
 0x658   :  { %1647 = vst [vmem:[#allocation9 + $0x58] sm:$0xff] %v1644_v40  ;;  %v1659_v19 = vpack.c.bf16 %v1644_v40, %v1643_v44 }
 0x65a   :  { %1725 = vmatmul.mubr.bf16.vlgmr.msra.gmra.mrb[24].mxu0 %v1659_v19  ;;  %1768 = vmatmul.mubr.bf16.vlgmr.msra.gmra.mrb[24].mxu1 %v1659_v19 }
 0x65b   :  { %1870 = vmatpush1.bf16.msra.mxu0 %v2862_v31  ;;  %1913 = vmatpush1.bf16.msra.mxu1 %v2864_v32 }
 0x65c   :  { %1871 = vmatprep.subr.bf16.mxu0 %v2868_v34  ;;  %1914 = vmatprep.subr.bf16.mxu1 %v2870_v36 }
 0x65d   :  { %1901 = vmatprep.mubr.bf16.mxu0 %v2492_v6  ;;  %1944 = vmatprep.mubr.bf16.mxu1 %v2492_v6 }
 0x65f   :  { %1872 = vmatpush1.bf16.msra.mxu0 %v2874_v58  ;;  %1915 = vmatpush1.bf16.msra.mxu1 %v2876_v59 }
 0x660   :  { %1873 = vmatprep.subr.bf16.mxu0 %v2880_v61  ;;  %1916 = vmatprep.subr.bf16.mxu1 %v2882_v63 }
 0x663   :  { %1874 = vmatpush1.bf16.msra.mxu0 %v2886_v0  ;;  %1917 = vmatpush1.bf16.msra.mxu1 %v2888_v2 }
 0x664   :  { %1875 = vmatprep.subr.bf16.mxu0 %v2892_v3  ;;  %1918 = vmatprep.subr.bf16.mxu1 %v2894_v8 }
 0x667   :  { %1876 = vmatpush1.bf16.msra.mxu0 %v2898_v4  ;;  %1919 = vmatpush1.bf16.msra.mxu1 %v2957_v48 }
 0x668   :  { %1877 = vmatprep.subr.bf16.mxu0 %v2903_v7  ;;  %1920 = vmatprep.subr.bf16.mxu1 %v2960_v49 }
 0x66b   :  { %1878 = vmatpush1.bf16.msra.mxu0 %v2906_v9  ;;  %1921 = vmatpush1.bf16.msra.mxu1 %v2963_v50 }
 0x66c   :  { %1879 = vmatprep.subr.bf16.mxu0 %v2966_v52  ;;  %1922 = vmatprep.subr.bf16.mxu1 %v2968_v10 }
 0x66f   :  { %1880 = vmatpush1.bf16.msra.mxu0 %v2972_v13  ;;  %1923 = vmatpush1.bf16.msra.mxu1 %v2974_v14 }
 0x670   :  { %1881 = vmatprep.subr.bf16.mxu0 %v2978_v15  ;;  %1924 = vmatprep.subr.bf16.mxu1 %v2980_v16 }
 0x673   :  { %1882 = vmatpush1.bf16.msra.mxu0 %v2984_v17  ;;  %1925 = vmatpush1.bf16.msra.mxu1 %v2986_v5 }
 0x674   :  { %1883 = vmatprep.subr.bf16.mxu0 %v2990_v12  ;;  %1926 = vmatprep.subr.bf16.mxu1 %v2992_v42 }
 0x677   :  { %1884 = vmatpush1.bf16.msra.mxu0 %v2996_v51  ;;  %1927 = vmatpush1.bf16.msra.mxu1 %v2998_v54 }
 0x72d   :  { %v1726_v6 = vpop.f32.mrb[24].mxu0  ;;  %v1769_v31 = vpop.f32.mrb[24].mxu1 }
 0x72e   :  { %v2140_v32 = vadd.f32 %v1726_v6, %v2732_v60  ;;  %v1728_v34 = vpop.f32.mrb[25].mxu0  ;;  %v1771_v36 = vpop.f32.mrb[25].mxu1  ;;  %v2172_v7 = vadd.f32 %v1769_v31, %v2737_v1 }
 0x72f   :  { %v2141_v58 = vadd.f32 %v1728_v34, %v2735_v62  ;;  %v1730_v59 = vpop.f32.mrb[26].mxu0  ;;  %v1773_v61 = vpop.f32.mrb[26].mxu1  ;;  %v2173_v49 = vadd.f32 %v1771_v36, %v2744_v25 }
 0x730   :  { %v1786_v63 = vmul.f32 0.5, %v2140_v32  ;;  %v2142_v0 = vadd.f32 %v1730_v59, %v2732_v60  ;;  %v1732_v2 = vpop.f32.mrb[27].mxu0  ;;  %v1775_v3 = vpop.f32.mrb[27].mxu1  ;;  %v2174_v50 = vadd.f32 %v1773_v61, %v2737_v1 }
 0x731   :  { %v1794_v8 = vmul.f32 0.5, %v2141_v58  ;;  %v2143_v4 = vadd.f32 %v1732_v2, %v2735_v62  ;;  %v1804_v52 = vmul.f32 0.5, %v2173_v49  ;;  %v2175_v10 = vadd.f32 %v1775_v3, %v2744_v25 }
 0x732   :  { %2388 = vtanh.f32 %v1786_v63  ;;  %v1787_v9 = vmul.f32 0.5, %v2142_v0 }
 0x733   :  { %2390 = vtanh.f32 %v1794_v8  ;;  %v1795_v48 = vmul.f32 0.5, %v2143_v4  ;;  %v1805_v17 = vmul.f32 0.5, %v2175_v10 }
 0x734   :  { %2392 = vtanh.f32 %v1787_v9 }
 0x735   :  { %2394 = vtanh.f32 %v2172_v7 }
 0x736   :  { %2396 = vtanh.f32 %v1795_v48 }
 0x737   :  { %2398 = vtanh.f32 %v2174_v50 }
 0x738   :  { %2400 = vtanh.f32 %v1804_v52 }
 0x739   :  { %2402 = vtanh.f32 %v1805_v17 }
 0x73c   :  { %v2389_v13 = vpop.eup %2388 }
 0x73d   :  { %v2391_v14 = vpop.eup %2390  ;;  %v1790_v15 = vadd.f32 1.0, %v2389_v13 }
 0x73e   :  { %v1798_v16 = vadd.f32 1.0, %v2391_v14  ;;  %v2393_v5 = vpop.eup %2392 }
 0x73f   :  { %v1792_v12 = vmul.f32 0.5, %v1790_v15  ;;  %v2395_v42 = vpop.eup %2394  ;;  %v1791_v54 = vadd.f32 1.0, %v2393_v5 }
 0x740   :  { %v1800_v51 = vmul.f32 0.5, %v1798_v16  ;;  %v2397_v47 = vpop.eup %2396 }
 0x741   :  { %v1812_v38 = vmul.f32 %v1792_v12, %v3063_v27  ;;  %v1793_v56 = vmul.f32 0.5, %v1791_v54  ;;  %v1799_v33 = vadd.f32 1.0, %v2397_v47  ;;  %v2399_v21 = vpop.eup %2398 }
 0x742   :  { %v1814_v55 = vmul.f32 %v2395_v42, %v1800_v51  ;;  %v2401_v22 = vpop.eup %2400 }
 0x743   :  { %v1813_v11 = vmul.f32 %v1793_v56, %v3067_v39  ;;  %v1801_v23 = vmul.f32 0.5, %v1799_v33  ;;  %v1808_v28 = vadd.f32 1.0, %v2401_v22  ;;  %v2403_v35 = vpop.eup %2402 }
 0x744   :  { %v1816_v57 = vadd.f32 %v1814_v55, %v1812_v38  ;;  %v1809_v29 = vadd.f32 1.0, %v2403_v35 }
 0x745   :  { %v1815_v20 = vmul.f32 %v2399_v21, %v1801_v23  ;;  %v1810_v37 = vmul.f32 0.5, %v1808_v28 }
 0x746   :  { %2404 = vtanh.f32 %v1816_v57  ;;  %v1811_v53 = vmul.f32 0.5, %v1809_v29 }
 0x747   :  { %v1817_v24 = vadd.f32 %v1815_v20, %v1813_v11 }
 0x749   :  { %2406 = vtanh.f32 %v1817_v24 }
 0x750   :  { %v2405_v30 = vpop.eup %2404 }
 0x751   :  { %v1820_v27 = vmul.f32 %v2405_v30, %v1810_v37 }
 0x753   :  { %1823 = vst [vmem:[#allocation9 + $0x60] sm:$0xff] %v1820_v27  ;;  %v2407_v18 = vpop.eup %2406 }
 0x754   :  { %v1821_v41 = vmul.f32 %v2407_v18, %v1811_v53 }
 0x756   :  { %1824 = vst [vmem:[#allocation9 + $0x68] sm:$0xff] %v1821_v41  ;;  %v1836_v26 = vpack.c.bf16 %v1821_v41, %v1820_v27 }
 0x758   :  { %1902 = vmatmul.mubr.bf16.vlgmr.msra.gmra.mrb[28].mxu0 %v1836_v26  ;;  %1945 = vmatmul.mubr.bf16.vlgmr.msra.gmra.mrb[28].mxu1 %v1836_v26 }
 0x82b   :  { %v1903_v39 = vpop.f32.mrb[28].mxu0  ;;  %v1946_v43 = vpop.f32.mrb[28].mxu1 }
 0x82c   :  { %v2144_v44 = vadd.f32 %v1903_v39, %v2732_v60  ;;  %v1905_v45 = vpop.f32.mrb[29].mxu0  ;;  %v1948_v46 = vpop.f32.mrb[29].mxu1  ;;  %v2176_v61 = vadd.f32 %v1946_v43, %v2737_v1 }
 0x82d   :  { %v2145_v40 = vadd.f32 %v1905_v45, %v2735_v62  ;;  %v1907_v19 = vpop.f32.mrb[30].mxu0  ;;  %v1950_v6 = vpop.f32.mrb[30].mxu1  ;;  %v2177_v2 = vadd.f32 %v1948_v46, %v2744_v25 }
 0x82e   :  { %v1963_v31 = vmul.f32 0.5, %v2144_v44  ;;  %v2146_v32 = vadd.f32 %v1907_v19, %v2732_v60  ;;  %v1909_v34 = vpop.f32.mrb[31].mxu0  ;;  %v1952_v36 = vpop.f32.mrb[31].mxu1  ;;  %v2178_v3 = vadd.f32 %v1950_v6, %v2737_v1 }
 0x82f   :  { %v1971_v58 = vmul.f32 0.5, %v2145_v40  ;;  %v2147_v59 = vadd.f32 %v1909_v34, %v2735_v62  ;;  %v1981_v8 = vmul.f32 0.5, %v2177_v2  ;;  %v2179_v60 = vadd.f32 %v1952_v36, %v2744_v25 }
 0x830   :  { %2408 = vtanh.f32 %v1963_v31  ;;  %v1964_v63 = vmul.f32 0.5, %v2146_v32 }
 0x831   :  { %2410 = vtanh.f32 %v1971_v58  ;;  %v1972_v0 = vmul.f32 0.5, %v2147_v59  ;;  %v1982_v48 = vmul.f32 0.5, %v2179_v60 }
 0x832   :  { %2412 = vtanh.f32 %v1964_v63 }
 0x833   :  { %2414 = vtanh.f32 %v2176_v61 }
 0x834   :  { %2416 = vtanh.f32 %v1972_v0 }
 0x835   :  { %2418 = vtanh.f32 %v2178_v3 }
 0x836   :  { %2420 = vtanh.f32 %v1981_v8 }
 0x837   :  { %2422 = vtanh.f32 %v1982_v48 }
 0x83a   :  { %v2409_v4 = vpop.eup %2408 }
 0x83b   :  { %v2411_v7 = vpop.eup %2410  ;;  %v1967_v62 = vadd.f32 1.0, %v2409_v4 }
 0x83c   :  { %v1975_v9 = vadd.f32 1.0, %v2411_v7  ;;  %v2413_v49 = vpop.eup %2412 }
 0x83d   :  { %v1969_v50 = vmul.f32 0.5, %v1967_v62  ;;  %v2415_v52 = vpop.eup %2414  ;;  %v1968_v13 = vadd.f32 1.0, %v2413_v49 }
 0x83e   :  { %v1977_v10 = vmul.f32 0.5, %v1975_v9  ;;  %v2417_v14 = vpop.eup %2416 }
 0x83f   :  { %v1989_v15 = vmul.f32 %v1969_v50, %v1816_v57  ;;  %v1970_v1 = vmul.f32 0.5, %v1968_v13  ;;  %v1976_v17 = vadd.f32 1.0, %v2417_v14  ;;  %v2419_v42 = vpop.eup %2418 }
 0x840   :  { %v1991_v16 = vmul.f32 %v2415_v52, %v1977_v10  ;;  %v2421_v54 = vpop.eup %2420 }
 0x841   :  { %v1990_v25 = vmul.f32 %v1970_v1, %v1817_v24  ;;  %v1978_v12 = vmul.f32 0.5, %v1976_v17  ;;  %v1985_v38 = vadd.f32 1.0, %v2421_v54 }
 0x842   :  { %v1993_v5 = vadd.f32 %v1991_v16, %v1989_v15 }
 0x843   :  { %v1992_v51 = vmul.f32 %v2419_v42, %v1978_v12 }
 0x844   :  { %2424 = vtanh.f32 %v1993_v5  ;;  %2006 = vst [vmem:[#allocation11] sm:$0xff] %v1993_v5 }
 0x845   :  { %v1994_v47 = vadd.f32 %v1992_v51, %v1990_v25 }
 0x847   :  { %2426 = vtanh.f32 %v1994_v47  ;;  %2007 = vst [vmem:[#allocation11 + $0x8] sm:$0xff] %v1994_v47 }
 0x848   :  { %2439 = shalt.err (!%p2436_p4)
}
 0x849   :  { %s2440_s29 = scalar_lea.hbm %s3155_s5, 256 }
 0x84a   :  { %p2441_p5 = scmp.ne.s32.totalorder %s3155_s5, %s2440_s29  ;;  %p2444_p6 = scmp.lt.u32.totalorder %s2440_s29, %s3155_s5 }
 0x84c   :  { %p2446_p7 = pnand %p2444_p6, %p2441_p5 }
 0x84e   :  { %2449 = shalt.err (!%p2446_p7)
}
 0x84f   :  { %s2495_s8 = smov 128   ;;  %s2496_s9 = smov 8   ;;  %v2423_v55 = vpop.eup %2422  ;;  %v1987_v56 = vmul.f32 0.5, %v1985_v38 }
 0x850   :  { %2031 = dma.vmem_to_hbm [thread:$0]  %s2026_s25, 256, %s3155_s5, [#allocation12], %s2495_s8, %s2495_s8, %s2496_s9   ;;  %v1986_v33 = vadd.f32 1.0, %v2423_v55  ;;  %v2425_v57 = vpop.eup %2424 }
 0x851   :  { %v1997_v11 = vmul.f32 %v2425_v57, %v1987_v56  ;;  %s2497_s3 = smov [#allocation9]   ;;  %v2427_v21 = vpop.eup %2426 }
 0x852   :  { %s2013_s11 = sshll.u32 %s2497_s3, 4  ;;  %v1988_v23 = vmul.f32 0.5, %v1986_v33  ;;  %s2014_s11 = int_to_ptr.vmem [resolvable:$true] %s2013_s11 }
 0x853   :  { %2000 = vst [vmem:[#allocation9 + $0x70] sm:$0xff] %v1997_v11  ;;  %s2450_s12 = scalar_lea.vmem %s2014_s11, 2048  ;;  %p2455_p9 = scmp.lt.s32.totalorder %s2014_s11, %s2014_s11 }
 0x854   :  { %v1998_v20 = vmul.f32 %v2427_v21, %v1988_v23  ;;  %p2451_p8 = scmp.ne.s32.totalorder %s2014_s11, %s2450_s12  ;;  %p2456_p10 = scmp.lt.s32.totalorder %s2450_s12, %s2450_s12 }
 0x856   :  { %2001 = vst [vmem:[#allocation9 + $0x78] sm:$0xff] %v1998_v20  ;;  %p2457_p11 = por %p2456_p10, %p2455_p9 }
 0x858   :  { %p2458_p12 = pnand %p2457_p11, %p2451_p8 }
 0x85a   :  { %2461 = shalt.err (!%p2458_p12)
}
 0x85b   :  { %s2462_s14 = scalar_lea.hbm %s3154_s4, 2048 }
 0x85c   :  { %p2463_p13 = scmp.ne.s32.totalorder %s3154_s4, %s2462_s14  ;;  %p2466_p0 = scmp.lt.u32.totalorder %s2462_s14, %s3154_s4 }
 0x85e   :  { %p2468_p1 = pnand %p2466_p0, %p2463_p13 }
 0x860   :  { %2471 = shalt.err (!%p2468_p1)
}
 0x861   :  { %2019 = dma.vmem_to_hbm [thread:$0]  %s2014_s11, 2048, %s3154_s4, [#allocation10], %s2495_s8, %s2495_s8, %s2496_s9  }
 0x862   :  { %2478 = dma.done.wait [#allocation10], 2048  }
 0x863   :  { %2479 = vsyncadd [#allocation10], 4294965248 }
 0x864   :  { %2480 = dma.done.wait [#allocation12], 256  }
 0x865   :  { %2481 = vsyncadd [#allocation12], 4294967040 }
 0x866   :  { %2038 = vsyncpa [#allocation10], 1 }
 0x867   :  { %2039 = vsyncpa [#allocation12], 1 }
 0x868   :  { %2040 = vsyncmov [#allocation8] }
 0x86b   :  { %s2041_s21 = vpop.sfrf %2040 }
 0x86c   :  { %p2113_p2 = scmp.ne.s32.totalorder %s2041_s21, 0 }
 0x86e   :  { %2045 = shalt.err (%p2113_p2)  }
 0x86f   :  { %2047 = vsyncmov [#allocation8 + $0x1] }
 0x872   :  { %s2048_s22 = vpop.sfrf %2047 }
 0x873   :  { %p2114_p3 = scmp.ne.s32.totalorder %s2048_s22, 0 }
 0x875   :  { %2052 = shalt.err (%p2114_p3)  }
 0x876   :  { %2054 = vsyncmov [#allocation8 + $0x2] }
 0x879   :  { %s2055_s23 = vpop.sfrf %2054 }
 0x87a   :  { %p2115_p4 = scmp.ne.s32.totalorder %s2055_s23, 0 }
 0x87c   :  { %2059 = shalt.err (%p2115_p4)  }

</bundles_post_ra>
